<compile_context>
chip_gen: v6e
topology: v6e:2x2x1
jax: 0.10.0
libtpu: 0.0.40
codegen_flags: <defaults>
</compile_context>

<pallas_src>
import functools

import jax
import jax.numpy as jnp
from jax import lax
from jax.experimental import pallas as pl
from jax.experimental.pallas import tpu as pltpu


def _silu(x):
    return x * jax.nn.sigmoid(x)


def _same_padding(in_dim, kernel_size, stride):
    # Faithful to Convolution2dSamePadding: pad is computed from input_size[0]
    # only and applied to BOTH spatial dims (the module's actual behavior).
    if in_dim % stride == 0:
        pad = max(kernel_size - stride, 0)
    else:
        pad = max(kernel_size - in_dim % stride, 0)
    lo = pad // 2
    hi = pad - lo
    return lo, hi


# ---------------------------------------------------------------------------
# Kernel A (stride == 1, lane-dense): last dim is W*C so all 128 lanes are used.
# ---------------------------------------------------------------------------
def _dw_kernel_fused_wc(x_ref, w_ref, s_ref, b_ref, o_ref, xpad_ref, *,
                        K, H, W, C, Ho, Wo, pt, pw):
    # x_ref:    (1, H, W*C)    one batch element (input dtype)
    # w_ref:    (K*K, Wo*C)    depthwise taps, pre-tiled along W (lane-dense)
    # s_ref/b_ref: (1, Wo*C)   folded BN scale / shift, tiled the same way
    # o_ref:    (1, Ho, Wo*C)  output block (f32)
    # xpad_ref: (Hp, Wp*C)     f32 scratch: "same" padding lives only in VMEM
    xpad_ref[...] = jnp.zeros_like(xpad_ref)
    xpad_ref[pt:pt + H, pw * C:(pw + W) * C] = x_ref[0].astype(jnp.float32)

    acc = jnp.zeros((Ho, Wo * C), jnp.float32)
    for kh in range(K):                      # K*K small & static -> unrolled
        for kw in range(K):
            # contiguous, lane-dense ref-side tap window
            xs = xpad_ref[kh:kh + Ho, kw * C:kw * C + Wo * C]
            acc = acc + xs * w_ref[kh * K + kw:kh * K + kw + 1, :]
    y = acc * s_ref[...] + b_ref[...]
    o_ref[0] = _silu(y)


# ---------------------------------------------------------------------------
# Kernel B (generic layout, used for stride > 1): channels stay on lanes.
# ---------------------------------------------------------------------------
def _dw_kernel_hwc(x_ref, w_ref, s_ref, b_ref, o_ref, xpad_ref, *,
                   K, stride, H, W, C, Ho, Wo, pt, pw):
    # x_ref: (1, H, W, C); xpad_ref: (Hp, Wp, C) f32 scratch; o_ref: (1, Ho, Wo, C)
    xpad_ref[...] = jnp.zeros_like(xpad_ref)
    xpad_ref[pt:pt + H, pw:pw + W, :] = x_ref[0].astype(jnp.float32)

    acc = jnp.zeros((Ho, Wo, C), jnp.float32)
    for kh in range(K):
        for kw in range(K):
            if stride == 1:
                xs = xpad_ref[kh:kh + Ho, kw:kw + Wo, :]
            else:
                # ref-side strided tap window (no value-level relayout copies)
                xs = xpad_ref[pl.ds(kh, Ho, stride), pl.ds(kw, Wo, stride), :]
            acc = acc + xs * w_ref[kh * K + kw:kh * K + kw + 1, :]
    y = acc * s_ref[...] + b_ref[...]
    o_ref[0] = _silu(y)


# ---------------------------------------------------------------------------
# Wrapper: fused depthwise conv ("same" pad) + folded BN + SiLU
# ---------------------------------------------------------------------------
def depthwise_conv_bn_silu(x_nhwc, w_kkc, bn_scale, bn_shift, *, kernel_size,
                           stride, conv_bias=None, layout="auto"):
    """x_nhwc: (N,H,W,C); w_kkc: (K,K,C) depthwise weights
    (PyTorch weight (C,1,K,K) maps to w_kkc = weight[:,0].transpose(1,2,0))."""
    N, H, W, C = x_nhwc.shape
    K = kernel_size
    assert w_kkc.shape == (K, K, C)
    # TODO(synk): only the depthwise case (groups == in_channels == out_channels)
    # is implemented; general grouped conv / channel multiplier > 1 is not.

    pt, pb = _same_padding(H, K, stride)   # module derives pad from H only ...
    pw, pr = pt, pb                        # ... and applies it to W as well
    Hp, Wp = H + pt + pb, W + pw + pr
    Ho = (Hp - K) // stride + 1
    Wo = (Wp - K) // stride + 1

    scale = bn_scale.astype(jnp.float32)
    shift = bn_shift.astype(jnp.float32)
    if conv_bias is not None:              # fold conv bias through the BN affine
        shift = shift + scale * conv_bias.astype(jnp.float32)
    w_flat = w_kkc.reshape(K * K, C).astype(jnp.float32)

    if layout == "auto":
        layout = "fused_wc" if stride == 1 else "hwc"

    if layout == "fused_wc":
        assert stride == 1, "fused_wc layout requires stride == 1"
        # Fold W into the lane axis -> fully dense 128-lane vregs/stores even
        # for small channel counts. Tiled weights/scale/shift are tiny.
        x_in = x_nhwc.reshape(N, H, W * C)
        w_in = jnp.tile(w_flat, (1, Wo))
        s_in = jnp.tile(scale.reshape(1, C), (1, Wo))
        b_in = jnp.tile(shift.reshape(1, C), (1, Wo))
        kernel = functools.partial(_dw_kernel_fused_wc, K=K, H=H, W=W, C=C,
                                   Ho=Ho, Wo=Wo, pt=pt, pw=pw)
        in_specs = [
            pl.BlockSpec((1, H, W * C), lambda n: (n, 0, 0)),
            pl.BlockSpec((K * K, Wo * C), lambda n: (0, 0)),
            pl.BlockSpec((1, Wo * C), lambda n: (0, 0)),
            pl.BlockSpec((1, Wo * C), lambda n: (0, 0)),
        ]
        out_spec = pl.BlockSpec((1, Ho, Wo * C), lambda n: (n, 0, 0))
        out_shape = jax.ShapeDtypeStruct((N, Ho, Wo * C), jnp.float32)
        scratch = [pltpu.VMEM((Hp, Wp * C), jnp.float32)]
        scratch_bytes = Hp * Wp * C * 4
        param_bytes = (K * K + 2) * Wo * C * 4
    else:
        x_in = x_nhwc
        w_in = w_flat
        s_in = scale.reshape(1, C)
        b_in = shift.reshape(1, C)
        kernel = functools.partial(_dw_kernel_hwc, K=K, stride=stride, H=H,
                                   W=W, C=C, Ho=Ho, Wo=Wo, pt=pt, pw=pw)
        in_specs = [
            pl.BlockSpec((1, H, W, C), lambda n: (n, 0, 0, 0)),
            pl.BlockSpec((K * K, C), lambda n: (0, 0)),
            pl.BlockSpec((1, C), lambda n: (0, 0)),
            pl.BlockSpec((1, C), lambda n: (0, 0)),
        ]
        out_spec = pl.BlockSpec((1, Ho, Wo, C), lambda n: (n, 0, 0, 0))
        out_shape = jax.ShapeDtypeStruct((N, Ho, Wo, C), jnp.float32)
        scratch = [pltpu.VMEM((Hp, Wp, C), jnp.float32)]
        scratch_bytes = Hp * Wp * C * 4
        param_bytes = (K * K + 2) * C * 4

    # Explicit VMEM budget (double-buffered in/out blocks + scratch + params,
    # plus headroom) so the pipeline stays alive on v7x's 64 MiB VMEM too.
    elt = jnp.dtype(x_nhwc.dtype).itemsize
    vmem_bytes = (2 * H * W * C * elt + 2 * Ho * Wo * C * 4
                  + scratch_bytes + param_bytes + (2 << 20))
    vmem_bytes = int(min(max(vmem_bytes, 4 << 20), 64 << 20))

    # TODO(synk): for large per-image activations (H*W*C beyond a few MiB) add a
    # second "Ho tile" grid axis with a K-1 row halo to bound VMEM further.
    out = pl.pallas_call(
        kernel,
        out_shape=out_shape,
        grid=(N,),
        in_specs=in_specs,
        out_specs=out_spec,
        scratch_shapes=scratch,
        compiler_params=pltpu.CompilerParams(
            dimension_semantics=("parallel",),
            vmem_limit_bytes=vmem_bytes),
    )(x_in, w_in, s_in, b_in)
    return out.reshape(N, Ho, Wo, C)


def depthwise_conv_module(x_nchw, params, *, kernel_size, stride, layout="auto"):
    # NCHW (PyTorch) <-> NHWC (TPU lanes = channels) only at the boundary; in a
    # full network activations would stay NHWC and these transposes disappear.
    x_nhwc = jnp.transpose(x_nchw, (0, 2, 3, 1))
    y = depthwise_conv_bn_silu(
        x_nhwc, params['w'], params['bn_scale'], params['bn_shift'],
        kernel_size=kernel_size, stride=stride,
        conv_bias=params.get('bias'), layout=layout)
    return jnp.transpose(y, (0, 3, 1, 2))


# ---------------------------------------------------------------------------
# Deterministic synthetic parameters (inference-mode BN folded to scale/shift)
# ---------------------------------------------------------------------------
def init_params(key, channels, kernel_size, with_bias=False):
    k_w, k_g, k_b, k_m, k_v, k_cb = jax.random.split(key, 6)
    w = (jax.random.normal(k_w, (kernel_size, kernel_size, channels)) * 0.2
         ).astype(jnp.float32)
    gamma = jax.random.uniform(k_g, (channels,), minval=0.5, maxval=1.5)
    beta = jax.random.normal(k_b, (channels,)) * 0.1
    mean = jax.random.normal(k_m, (channels,)) * 0.1
    var = jax.random.uniform(k_v, (channels,), minval=0.5, maxval=1.5)
    eps = 1e-5
    scale = (gamma / jnp.sqrt(var + eps)).astype(jnp.float32)
    shift = (beta - mean * scale).astype(jnp.float32)
    # TODO(synk): training-mode BatchNorm (batch statistics + stat updates) is
    # not implemented; this is the eval/inference path.
    p = {'w': w, 'bn_scale': scale, 'bn_shift': shift}
    if with_bias:
        p['bias'] = (jax.random.normal(k_cb, (channels,)) * 0.1).astype(jnp.float32)
    return p


# ---------------------------------------------------------------------------
# Pure-JAX reference (independent of the Pallas kernels)
# ---------------------------------------------------------------------------
def ref_forward(x_nchw, params, *, kernel_size, stride):
    x = jnp.transpose(x_nchw, (0, 2, 3, 1)).astype(jnp.float32)
    N, H, W, C = x.shape
    K = kernel_size
    pt, pb = _same_padding(H, K, stride)
    xp = jnp.pad(x, ((0, 0), (pt, pb), (pt, pb), (0, 0)))
    w_hwio = params['w'][:, :, None, :].astype(jnp.float32)
    dn = lax.conv_dimension_numbers(xp.shape, w_hwio.shape, ('NHWC', 'HWIO', 'NHWC'))
    y = lax.conv_general_dilated(xp, w_hwio, (stride, stride), 'VALID',
                                 dimension_numbers=dn, feature_group_count=C)
    if params.get('bias') is not None:
        y = y + params['bias']
    y = y * params['bn_scale'] + params['bn_shift']
    y = _silu(y)
    return jnp.transpose(y, (0, 3, 1, 2))


if __name__ == "__main__":
    key = jax.random.PRNGKey(0)
    k_x, k_p = jax.random.split(key)

    # DepthWiseConv(in_channels=32, out_channels=32, kernel_size=3, stride=1,
    #               bias=False, input_size=(16, 16), groups=32)
    N, C, H, W = 2, 32, 16, 16
    K, stride = 3, 1

    x = jax.random.normal(k_x, (N, C, H, W), dtype=jnp.float32)
    params = init_params(k_p, C, K, with_bias=False)

    ref = ref_forward(x, params, kernel_size=K, stride=stride)

    # Optimized lane-dense path (default for stride == 1).
    out = depthwise_conv_module(x, params, kernel_size=K, stride=stride)
    out = jax.block_until_ready(out)
    assert out.shape == (N, C, H, W), out.shape
    err = float(jnp.max(jnp.abs(out - ref)))
    assert jnp.allclose(out, ref, rtol=1e-4, atol=1e-4), f"fused_wc max_err={err}"

    # Generic channels-on-lanes layout (the path used when stride > 1),
    # exercised here at stride=1 for runtime coverage.
    out2 = depthwise_conv_module(x, params, kernel_size=K, stride=stride,
                                 layout="hwc")
    out2 = jax.block_until_ready(out2)
    err2 = float(jnp.max(jnp.abs(out2 - ref)))
    assert jnp.allclose(out2, ref, rtol=1e-4, atol=1e-4), f"hwc max_err={err2}"

    print("KERNEL_OK")
</pallas_src>

<mosaic_0001>
module attributes {stable_mosaic.version = 11 : i64} {
  func.func @_dw_kernel_fused_wc(%arg0: i32, %arg1: memref<1x16x512xf32, #tpu.memory_space<vmem>>, %arg2: memref<9x512xf32, #tpu.memory_space<vmem>>, %arg3: memref<1x512xf32, #tpu.memory_space<vmem>>, %arg4: memref<1x512xf32, #tpu.memory_space<vmem>>, %arg5: memref<1x16x512xf32, #tpu.memory_space<vmem>>, %arg6: memref<18x576xf32, #tpu.memory_space<vmem>>) attributes {dimension_semantics = [#tpu.dimension_semantics<parallel>], iteration_bounds = array<i64: 2>, scalar_prefetch = 0 : i64, scratch_operands = 1 : i64, tpu.core_type = #tpu.core_type<tc>, window_params = [{transform_indices = @transform_0, window_bounds = array<i64: 1, 16, 512>}, {pipeline_mode = #tpu.pipeline_mode<synchronous>, transform_indices = @transform_1, window_bounds = array<i64: 9, 512>}, {pipeline_mode = #tpu.pipeline_mode<synchronous>, transform_indices = @transform_2, window_bounds = array<i64: 1, 512>}, {pipeline_mode = #tpu.pipeline_mode<synchronous>, transform_indices = @transform_3, window_bounds = array<i64: 1, 512>}, {transform_indices = @transform_4, window_bounds = array<i64: 1, 16, 512>}]} {
    %cst = arith.constant 0.000000e+00 : f32
    %0 = vector.broadcast %cst : f32 to vector<18x576xf32>
    %c0 = arith.constant 0 : index
    %c0_0 = arith.constant 0 : index
    %1 = vector.load %arg6[%c0, %c0_0] : memref<18x576xf32, #tpu.memory_space<vmem>>, vector<18x576xf32>
    tpu.vector_store %arg6[%c0, %c0_0], %0 {strides = array<i32>} : memref<18x576xf32, #tpu.memory_space<vmem>>, vector<18x576xf32>,
    %c0_1 = arith.constant 0 : index
    %c0_2 = arith.constant 0 : index
    %c0_3 = arith.constant 0 : index
    %2 = vector.load %arg1[%c0_1, %c0_2, %c0_3] : memref<1x16x512xf32, #tpu.memory_space<vmem>>, vector<1x16x512xf32>
    %3 = vector.shape_cast %2 : vector<1x16x512xf32> to vector<16x512xf32>
    %c1 = arith.constant 1 : index
    %c32 = arith.constant 32 : index
    %4 = vector.load %arg6[%c1, %c32] : memref<18x576xf32, #tpu.memory_space<vmem>>, vector<16x512xf32>
    tpu.vector_store %arg6[%c1, %c32], %3 {strides = array<i32>} : memref<18x576xf32, #tpu.memory_space<vmem>>, vector<16x512xf32>,
    %cst_4 = arith.constant 0.000000e+00 : f32
    %5 = vector.broadcast %cst_4 : f32 to vector<16x512xf32>
    %c0_5 = arith.constant 0 : index
    %c0_6 = arith.constant 0 : index
    %6 = vector.load %arg6[%c0_5, %c0_6] : memref<18x576xf32, #tpu.memory_space<vmem>>, vector<16x512xf32>
    %c0_7 = arith.constant 0 : index
    %c0_8 = arith.constant 0 : index
    %7 = vector.load %arg2[%c0_7, %c0_8] : memref<9x512xf32, #tpu.memory_space<vmem>>, vector<1x512xf32>
    %8 = vector.broadcast %7 : vector<1x512xf32> to vector<16x512xf32>
    %9 = arith.mulf %6, %8 : vector<16x512xf32>
    %10 = arith.addf %5, %9 : vector<16x512xf32>
    %c0_9 = arith.constant 0 : index
    %c32_10 = arith.constant 32 : index
    %11 = vector.load %arg6[%c0_9, %c32_10] : memref<18x576xf32, #tpu.memory_space<vmem>>, vector<16x512xf32>
    %c1_11 = arith.constant 1 : index
    %c0_12 = arith.constant 0 : index
    %12 = vector.load %arg2[%c1_11, %c0_12] : memref<9x512xf32, #tpu.memory_space<vmem>>, vector<1x512xf32>
    %13 = vector.broadcast %12 : vector<1x512xf32> to vector<16x512xf32>
    %14 = arith.mulf %11, %13 : vector<16x512xf32>
    %15 = arith.addf %10, %14 : vector<16x512xf32>
    %c0_13 = arith.constant 0 : index
    %c64 = arith.constant 64 : index
    %16 = vector.load %arg6[%c0_13, %c64] : memref<18x576xf32, #tpu.memory_space<vmem>>, vector<16x512xf32>
    %c2 = arith.constant 2 : index
    %c0_14 = arith.constant 0 : index
    %17 = vector.load %arg2[%c2, %c0_14] : memref<9x512xf32, #tpu.memory_space<vmem>>, vector<1x512xf32>
    %18 = vector.broadcast %17 : vector<1x512xf32> to vector<16x512xf32>
    %19 = arith.mulf %16, %18 : vector<16x512xf32>
    %20 = arith.addf %15, %19 : vector<16x512xf32>
    %c1_15 = arith.constant 1 : index
    %c0_16 = arith.constant 0 : index
    %21 = vector.load %arg6[%c1_15, %c0_16] : memref<18x576xf32, #tpu.memory_space<vmem>>, vector<16x512xf32>
    %c3 = arith.constant 3 : index
    %c0_17 = arith.constant 0 : index
    %22 = vector.load %arg2[%c3, %c0_17] : memref<9x512xf32, #tpu.memory_space<vmem>>, vector<1x512xf32>
    %23 = vector.broadcast %22 : vector<1x512xf32> to vector<16x512xf32>
    %24 = arith.mulf %21, %23 : vector<16x512xf32>
    %25 = arith.addf %20, %24 : vector<16x512xf32>
    %c1_18 = arith.constant 1 : index
    %c32_19 = arith.constant 32 : index
    %26 = vector.load %arg6[%c1_18, %c32_19] : memref<18x576xf32, #tpu.memory_space<vmem>>, vector<16x512xf32>
    %c4 = arith.constant 4 : index
    %c0_20 = arith.constant 0 : index
    %27 = vector.load %arg2[%c4, %c0_20] : memref<9x512xf32, #tpu.memory_space<vmem>>, vector<1x512xf32>
    %28 = vector.broadcast %27 : vector<1x512xf32> to vector<16x512xf32>
    %29 = arith.mulf %26, %28 : vector<16x512xf32>
    %30 = arith.addf %25, %29 : vector<16x512xf32>
    %c1_21 = arith.constant 1 : index
    %c64_22 = arith.constant 64 : index
    %31 = vector.load %arg6[%c1_21, %c64_22] : memref<18x576xf32, #tpu.memory_space<vmem>>, vector<16x512xf32>
    %c5 = arith.constant 5 : index
    %c0_23 = arith.constant 0 : index
    %32 = vector.load %arg2[%c5, %c0_23] : memref<9x512xf32, #tpu.memory_space<vmem>>, vector<1x512xf32>
    %33 = vector.broadcast %32 : vector<1x512xf32> to vector<16x512xf32>
    %34 = arith.mulf %31, %33 : vector<16x512xf32>
    %35 = arith.addf %30, %34 : vector<16x512xf32>
    %c2_24 = arith.constant 2 : index
    %c0_25 = arith.constant 0 : index
    %36 = vector.load %arg6[%c2_24, %c0_25] : memref<18x576xf32, #tpu.memory_space<vmem>>, vector<16x512xf32>
    %c6 = arith.constant 6 : index
    %c0_26 = arith.constant 0 : index
    %37 = vector.load %arg2[%c6, %c0_26] : memref<9x512xf32, #tpu.memory_space<vmem>>, vector<1x512xf32>
    %38 = vector.broadcast %37 : vector<1x512xf32> to vector<16x512xf32>
    %39 = arith.mulf %36, %38 : vector<16x512xf32>
    %40 = arith.addf %35, %39 : vector<16x512xf32>
    %c2_27 = arith.constant 2 : index
    %c32_28 = arith.constant 32 : index
    %41 = vector.load %arg6[%c2_27, %c32_28] : memref<18x576xf32, #tpu.memory_space<vmem>>, vector<16x512xf32>
    %c7 = arith.constant 7 : index
    %c0_29 = arith.constant 0 : index
    %42 = vector.load %arg2[%c7, %c0_29] : memref<9x512xf32, #tpu.memory_space<vmem>>, vector<1x512xf32>
    %43 = vector.broadcast %42 : vector<1x512xf32> to vector<16x512xf32>
    %44 = arith.mulf %41, %43 : vector<16x512xf32>
    %45 = arith.addf %40, %44 : vector<16x512xf32>
    %c2_30 = arith.constant 2 : index
    %c64_31 = arith.constant 64 : index
    %46 = vector.load %arg6[%c2_30, %c64_31] : memref<18x576xf32, #tpu.memory_space<vmem>>, vector<16x512xf32>
    %c8 = arith.constant 8 : index
    %c0_32 = arith.constant 0 : index
    %47 = vector.load %arg2[%c8, %c0_32] : memref<9x512xf32, #tpu.memory_space<vmem>>, vector<1x512xf32>
    %48 = vector.broadcast %47 : vector<1x512xf32> to vector<16x512xf32>
    %49 = arith.mulf %46, %48 : vector<16x512xf32>
    %50 = arith.addf %45, %49 : vector<16x512xf32>
    %c0_33 = arith.constant 0 : index
    %c0_34 = arith.constant 0 : index
    %51 = vector.load %arg3[%c0_33, %c0_34] : memref<1x512xf32, #tpu.memory_space<vmem>>, vector<1x512xf32>
    %52 = vector.broadcast %51 : vector<1x512xf32> to vector<16x512xf32>
    %53 = arith.mulf %50, %52 : vector<16x512xf32>
    %c0_35 = arith.constant 0 : index
    %c0_36 = arith.constant 0 : index
    %54 = vector.load %arg4[%c0_35, %c0_36] : memref<1x512xf32, #tpu.memory_space<vmem>>, vector<1x512xf32>
    %55 = vector.broadcast %54 : vector<1x512xf32> to vector<16x512xf32>
    %56 = arith.addf %53, %55 : vector<16x512xf32>
    %57 = arith.negf %56 : vector<16x512xf32>
    %58 = math.exp %57 : vector<16x512xf32>
    %cst_37 = arith.constant 1.000000e+00 : f32
    %59 = vector.broadcast %cst_37 : f32 to vector<16x512xf32>
    %60 = arith.addf %59, %58 : vector<16x512xf32>
    %61 = arith.divf %59, %60 : vector<16x512xf32>
    %62 = arith.mulf %56, %61 : vector<16x512xf32>
    %c0_38 = arith.constant 0 : index
    %c0_39 = arith.constant 0 : index
    %c0_40 = arith.constant 0 : index
    %63 = vector.load %arg5[%c0_38, %c0_39, %c0_40] : memref<1x16x512xf32, #tpu.memory_space<vmem>>, vector<1x16x512xf32>
    %64 = vector.shape_cast %63 : vector<1x16x512xf32> to vector<16x512xf32>
    %65 = vector.shape_cast %62 : vector<16x512xf32> to vector<1x16x512xf32>
    tpu.vector_store %arg5[%c0_38, %c0_39, %c0_40], %65 {strides = array<i32>} : memref<1x16x512xf32, #tpu.memory_space<vmem>>, vector<1x16x512xf32>,
    return
  }
  func.func @transform_0(%arg0: i32) -> (i32, i32, i32) {
    %c0_i32 = arith.constant 0 : i32
    %c0_i32_0 = arith.constant 0 : i32
    %c0_i32_1 = arith.constant 0 : i32
    return %arg0, %c0_i32, %c0_i32_0 : i32, i32, i32
  }
  func.func @transform_1(%arg0: i32) -> (i32, i32) {
    %c0_i32 = arith.constant 0 : i32
    %c0_i32_0 = arith.constant 0 : i32
    %c0_i32_1 = arith.constant 0 : i32
    return %c0_i32, %c0_i32_0 : i32, i32
  }
  func.func @transform_2(%arg0: i32) -> (i32, i32) {
    %c0_i32 = arith.constant 0 : i32
    %c0_i32_0 = arith.constant 0 : i32
    %c0_i32_1 = arith.constant 0 : i32
    return %c0_i32, %c0_i32_0 : i32, i32
  }
  func.func @transform_3(%arg0: i32) -> (i32, i32) {
    %c0_i32 = arith.constant 0 : i32
    %c0_i32_0 = arith.constant 0 : i32
    %c0_i32_1 = arith.constant 0 : i32
    return %c0_i32, %c0_i32_0 : i32, i32
  }
  func.func @transform_4(%arg0: i32) -> (i32, i32, i32) {
    %c0_i32 = arith.constant 0 : i32
    %c0_i32_0 = arith.constant 0 : i32
    %c0_i32_1 = arith.constant 0 : i32
    return %arg0, %c0_i32, %c0_i32_0 : i32, i32, i32
  }
}

</mosaic_0001>

<bundles_post_ra>
// kernel: tpu_custom_call.1
= control target key start
LH: loop header
LB: loop body
LE: loop exit
PB: predicated region body
PF: predicated region fallthrough
CT: control target
= control target key end

     0   :  { %9 = vsyncpa [#allocation4], 0  ;;  %s2784_s0 = inlined_call_operand.hbm [shape: f32[2,16,512], index: 0, kind: input, shape index: {}]   ;;  %s2785_s1 = inlined_call_operand.hbm [shape: f32[9,512], index: 1, kind: input, shape index: {}]   ;;  %s2786_s2 = inlined_call_operand.hbm [shape: f32[1,512], index: 2, kind: input, shape index: {}]   ;;  %s2787_s3 = inlined_call_operand.vmem [shape: f32[1,512], index: 3, kind: input, shape index: {}]   ;;  %s2788_s4 = inlined_call_operand.hbm [shape: f32[2,16,512], index: 4, kind: output, shape index: {}]  }
   0x1   :  { %11 = vsyncpa [#allocation4 + $0x1], 0 }
   0x2   :  { %12 = vsyncpa [#allocation7], 0 }
   0x3   :  { %13 = vsyncpa [#allocation5], 0 }
   0x4   :  { %15 = vsyncpa [#allocation5 + $0x1], 0  ;;  %s1879_s15 = smov 0   ;;  %s1881_s16 = smov 0  }
   0x5   :  { %s1883_s17 = smov 0   ;;  %s1885_s18 = smov 0  }
   0x6 LB: > { %s1900_s19 = sadd.s32 4294967295, %s1841_s18   ;;  %s1559_s20 = sadd.s32 4294967294, %s1841_s18   ;;  %s1841_s18 = sphi %s1885_s18, %s2867_s18   ;;  %s1837_s17 = sphi %s1883_s17, %s2866_s17   ;;  %s1833_s16 = sphi %s1881_s16, %s2865_s16   ;;  %s1829_s15 = sphi %s1879_s15, %s2864_s15  }
   0x7   : > { %p41_p0 = scmp.ne.s32.totalorder %s1833_s16, %s1829_s15  ;;  %p2789_p1 = scmp.eq.s32.totalorder %s1900_s19, 0 }
   0x8   : > { %p128_p2 = scmp.eq.s32.totalorder %s1900_s19, 1  ;;  %p134_p3 = scmp.eq.s32.totalorder %s1559_s20, 1 }
   0x9   : > { %p1909_p4 = por %p2789_p1, %p41_p0  ;;  %p1560_p5 = scmp.ge.s32.totalorder %s1841_s18, 1 }
   0xa   : > { %p1914_p6 = por %p134_p3, %p41_p0  ;;  %p141_p7 = scmp.lt.s32.totalorder %s1841_s18, 3 }
   0xb   : > { %s2805_s21 = scalar_select %p1909_p4, 1, 0 }
   0xc   : > { %s2806_s22 = scalar_select %p1914_p6, 1, 0 }
   0xd   : > { %p1919_p8 = pnand %p1560_p5, %p141_p7  ;;  %s1843_s24 = smov [#allocation6]  }
   0xe   : > { %s153_s25 = sshll.u32 %s1843_s24, 4  ;;  %s1844_s27 = smov [#allocation8]   ;;  %s154_s25 = int_to_ptr.vmem [resolvable:$true] %s153_s25 }
   0xf   : > { %s2807_s23 = scalar_select %p1919_p8, 1, 0 }
  0x10   : > { %p1599_p9 = pneg %p1919_p8  ;;  %s167_s28 = sshll.u32 %s1844_s27, 4  ;;  %s168_s28 = int_to_ptr.vmem [resolvable:$true] %s167_s28 }
  0x11   : > { %s1704_s29 = scalar_lea.vmem %s154_s25, 1024  ;;  %p1712_p5 = scmp.lt.s32.totalorder %s154_s25, %s154_s25 }
  0x12   : > { %p1928_p11 = pnand %p1599_p9, %p2789_p1  ;;  %p1705_p13 = scmp.ne.s32.totalorder %s154_s25, %s1704_s29 }
  0x13   : > { %p1713_p7 = scmp.lt.s32.totalorder %s1704_s29, %s1704_s29 }
  0x14   : > { %p1695_p12 = pneg %p1928_p11 }
  0x15   : > { %p1714_p10 = por %p1713_p7, %p1712_p5 }
  0x16   : > { %p1707_p0 = pnand %p1705_p13, %p1695_p12 }
  0x18   : > { %p1708_p3 = pneg %p1707_p0 }
  0x1a   : > { %p1715_p9 = pnand %p1714_p10, %p1708_p3 }
  0x1c   : > { %1718 = shalt.err (!%p1715_p9)
}
  0x1d   : > { %s1845_s30 = smov 512   ;;  %s1846_s5 = smov 32  }
  0x1e   : > { %1602 = dma.hbm_to_vmem [thread:$0]  (!%p1928_p11), %s2785_s1, 1024, %s154_s25, [#allocation7], %s1845_s30, %s1845_s30, %s1846_s5  }
  0x1f   : > { %s1730_s8 = scalar_lea.vmem %s168_s28, 64  ;;  %p1738_p10 = scmp.lt.s32.totalorder %s168_s28, %s168_s28 }
  0x20   : > { %p1731_p13 = scmp.ne.s32.totalorder %s168_s28, %s1730_s8  ;;  %p1739_p3 = scmp.lt.s32.totalorder %s1730_s8, %s1730_s8 }
  0x22   : > { %p1733_p0 = pnand %p1731_p13, %p1695_p12  ;;  %p1740_p7 = por %p1739_p3, %p1738_p10 }
  0x24   : > { %p1734_p5 = pneg %p1733_p0 }
  0x26   : > { %p1741_p9 = pnand %p1740_p7, %p1734_p5 }
  0x28   : > { %1744 = shalt.err (!%p1741_p9)
}
  0x29   : > { %1605 = dma.hbm_to_vmem [thread:$0]  (!%p1928_p11), %s2786_s2, 64, %s168_s28, [#allocation7]  }
  0x2a   : > { %s1954_s11 = sadd.s32 1, %s1841_s18   ;;  %s28_s12 = sadd.s32 1, %s1837_s17 }
  0x2b   : > { %s25_s13 = ssub.s32 %s1841_s18, %s1954_s11  ;;  %p35_p12 = scmp.ne.s32.totalorder %s1837_s17, %s1833_s16 }
  0x2c   : > { %p26_p13 = scmp.eq.s32.totalorder %s25_s13, 0  ;;  %p36_p0 = scmp.eq.s32.totalorder %s1841_s18, 0 }
  0x2d   : > { %p1964_p5 = por %p128_p2, %p35_p12  ;;  %p1616_p10 = scmp.lt.s32.totalorder %s1841_s18, 2 }
  0x2e   : > { %s1970_s20 = scalar_select %p26_p13, %s1837_s17, %s28_s12  }
  0x2f   : > { %s2809_s14 = scalar_select %p1964_p5, 1, 0 }
  0x30   : > { %p37_p3 = por %p36_p0, %p35_p12  ;;  %s181_s24 = sand.u32 1, %s1837_s17  }
  0x31   : > { %s1564_s25 = sshll.u32 %s181_s24, 6  ;;  %s1585_s26 = sshll.u32 %s1841_s18, 10 }
  0x32   : > { %s1977_s29 = scalar_lea.hbm %s2784_s0, %s1585_s26  ;;  %s185_s6 = scalar_lea.vmem [#allocation3], %s1564_s25 }
  0x33   : > { %s192_s7 = sshll.u32 %s185_s6, 4  ;;  %p1981_p2 = pnand %p1616_p10, %p37_p3  ;;  %s1979_s7 = int_to_ptr.vmem [resolvable:$true] %s192_s7 }
  0x34   : > { %s1985_s9 = scalar_lea.sflag [#allocation4], %s181_s24  ;;  %s1745_s10 = scalar_lea.hbm %s1977_s29, 1024 }
  0x35   : > { %p1746_p11 = scmp.ne.s32.totalorder %s1977_s29, %s1745_s10  ;;  %p1747_p7 = pneg %p1981_p2 }
  0x36   : > { %s1750_s25 = scalar_lea.hbm %s2784_s0, 2048  ;;  %p1751_p13 = scmp.lt.s32.totalorder %s1977_s29, %s2784_s0 }
  0x37   : > { %p1748_p9 = pnand %p1747_p7, %p1746_p11  ;;  %p1752_p0 = scmp.lt.s32.totalorder %s1750_s25, %s1745_s10 }
  0x39   : > { %p1749_p12 = pneg %p1748_p9  ;;  %p1753_p10 = por %p1752_p0, %p1751_p13 }
  0x3b   : > { %p1754_p3 = pnand %p1753_p10, %p1749_p12 }
  0x3d   : > { %1757 = shalt.err (!%p1754_p3)
}
  0x3e   : > { %s1758_s24 = scalar_lea.vmem %s1979_s7, 1024  ;;  %s1847_s28 = smov [#allocation3]  }
  0x3f   : > { %p1759_p1 = scmp.ne.s32.totalorder %s1979_s7, %s1758_s24  ;;  %s1763_s6 = sshll.u32 %s1847_s28, 4  ;;  %s1764_s6 = int_to_ptr.vmem [resolvable:$false] %s1763_s6 }
  0x40   : > { %s1765_s12 = scalar_lea.vmem %s1764_s6, 2048  ;;  %p1766_p9 = scmp.lt.s32.totalorder %s1979_s7, %s1764_s6 }
  0x41   : > { %p1761_p6 = pnand %p1759_p1, %p1747_p7  ;;  %p1767_p5 = scmp.lt.s32.totalorder %s1765_s12, %s1758_s24 }
  0x43   : > { %p1762_p11 = pneg %p1761_p6  ;;  %p1768_p4 = por %p1767_p5, %p1766_p9 }
  0x45   : > { %p1769_p8 = pnand %p1768_p4, %p1762_p11 }
  0x47   : > { %1772 = shalt.err (!%p1769_p8)
}
  0x48   : > { %1609 = dma.hbm_to_vmem [thread:$0]  (!%p1981_p2), %s1977_s29, 1024, %s1979_s7, %s1985_s9, %s1845_s30, %s1845_s30, %s1846_s5  }
  0x49   : > { %p2811_p1 = scmp.ne.s32.totalorder %s2807_s23, 0 }
  0x4b   : > { %204 = sbr.rel (%p2811_p1) target bundleno = 519 (0x207), region = 36 }
  0x50   : > { %s2012_s10 = sand.u32 1, %s1833_s16   ;;  %p2812_p4 = scmp.ne.s32.totalorder %s2805_s21, 0 }
  0x51   : > { %s1568_s13 = sshll.u32 %s2012_s10, 6  ;;  %s207_s25 = scalar_lea.sflag [#allocation4], %s2012_s10 }
  0x52   : > { %s2018_s8 = scalar_lea.vmem [#allocation3], %s1568_s13 }
  0x53   : > { %1816 = dma.done.wait (%p2812_p4), %s207_s25, 1024  }
  0x54   : > { %1818 = vsyncadd (%p2812_p4), %s207_s25, 4294966272  ;;  %p2813_p6 = scmp.eq.s32.totalorder %s1900_s19, 0 }
  0x56   : > { %1820 = dma.done.wait (%p2813_p6), [#allocation7], 1088   ;;  %p2814_p8 = pmov %p2813_p6 }
  0x57   : > { %v1848_v0 = vmov 0.0   ;;  %vm247_vm0 = vcmask 523264   ;;  %v262_v1 = vld [vmem:[%s2018_s8 + $0x10] sm:$0xff]  ;;  %v260_v2 = vld [vmem:[%s2018_s8] sm:$0xff]  ;;  %v263_v3 = vld [vmem:[%s2018_s8 + $0x18] sm:$0xff]  ;;  %s1849_s21 = smov 32   ;;  %v368_v19 = vlaneseq }
  0x58   : > { %1822 = vsyncadd (%p2814_p8), [#allocation7], 4294966208  ;;  %243 = vst [vmem:[#allocation2] sm:$0xff] %v1848_v0  ;;  %v279_v4 = vrot.slane %v262_v1, 7  ;;  %v277_v5 = vrot.slane %v260_v2, 7  ;;  %v261_v6 = vld [vmem:[%s2018_s8 + $0x8] sm:$0xff] }
  0x59   : > { %244 = vst [vmem:[#allocation2 + $0x8] sm:$0xff] %v1848_v0  ;;  %245 = vst [vmem:[#allocation2 + $0x10] sm:$0xff] %v1848_v0  ;;  %v265_v7 = vld [vmem:[%s2018_s8 + $0x28] sm:$0xff]  ;;  %v264_v8 = vld [vmem:[%s2018_s8 + $0x20] sm:$0xff]  ;;  %v280_v9 = vrot.slane %v263_v3, 7  ;;  %v278_v10 = vrot.slane %v261_v6, 7 }
  0x5a   : > { %246 = vst [vmem:[#allocation2 + $0x18] sm:$0xff] %v1848_v0  ;;  %249 = vst [vmem:[#allocation2 + $0x28] sm:$0xff] %v1848_v0  ;;  %293 = vrot.lane.b32.xlu1 %v279_v4, %s1849_s21  ;;  %289 = vrot.lane.b32.xlu0 %v277_v5, %s1849_s21  ;;  %v283_v11 = vrot.slane %v265_v7, 7  ;;  %v281_v12 = vrot.slane %v264_v8, 7  ;;  %vm276_vm1 = vcmask 1040384   ;;  %v267_v13 = vld [vmem:[%s2018_s8 + $0x38] sm:$0xff] }
  0x5b   : > { %254 = vst [vmem:[#allocation2 + $0x50] sm:$0x3] %v1848_v0  ;;  %255 = vst [vmem:[#allocation2 + $0x58] sm:$0x3] %v1848_v0  ;;  %v266_v14 = vld [vmem:[%s2018_s8 + $0x30] sm:$0xff]  ;;  %v287_v17 = vrot.slane %v267_v13, 7 }
  0x5c   : > { %256 = vst [vmem:[#allocation2 + $0x60] sm:$0x3] %v1848_v0  ;;  %257 = vst [vmem:[#allocation2 + $0x68] sm:$0x3] %v1848_v0  ;;  %v284_v15 = vsel %vm276_vm1, %v278_v10, %v283_v11  ;;  %v282_v16 = vsel %vm276_vm1, %v277_v5, %v281_v12  ;;  %v285_v18 = vrot.slane %v266_v14, 7  ;;  %vm258_vm2 = vcmask 517120  }
  0x5d   : > { %248 = vst.msk [vmem:[#allocation2 + $0x20] sm:$0xff] %vm247_vm0, %v1848_v0  ;;  %253 = vst.msk [vmem:[#allocation2 + $0x48] sm:$0xff] %vm247_vm0, %v1848_v0  ;;  %v288_v20 = vsel %vm276_vm1, %v280_v9, %v287_v17  ;;  %v369_v22 = vshrl.u32 %v368_v19, 7  ;;  %v407_v25 = vld [vmem:[#allocation6 + $0x1] ss:$8 sm:$0xf] }
  0x5e   : > { %295 = vrot.lane.b32.xlu1 %v280_v9, %s1849_s21  ;;  %291 = vrot.lane.b32.xlu0 %v278_v10, %s1849_s21  ;;  %v286_v21 = vsel %vm276_vm1, %v279_v4, %v285_v18  ;;  %259 = vst.msk [vmem:[#allocation2 + $0x70] sm:$0x3] %vm258_vm2, %v1848_v0  ;;  %v507_v32 = vld [vmem:[#allocation6 + $0x2] ss:$8 sm:$0xf]  ;;  %s1850_s23 = smov 64  }
  0x5f   : > { %v2048_v23 = vsub.s32 1, %v369_v22  ;;  %v2050_v24 = vsub.s32 0, %v369_v22  ;;  %v2056_v28 = vsub.s32 3, %v369_v22  ;;  %v2058_v29 = vsub.s32 2, %v369_v22  ;;  %s1851_s30 = smov 96   ;;  %s242_s7 = scalar_lea.vmem [#allocation9], %s1568_s13 }
  0x60   : > { %v700_v37 = vld [vmem:[#allocation6 + $0x4] ss:$8 sm:$0xf]  ;;  %v834_v42 = vld [vmem:[#allocation6 + $0x5] ss:$8 sm:$0xf] }
  0x61   : > { %2815 = vst [vmem:[#allocation13_spill] sm:$0xff] %v2048_v23  ;;  %v416_v26 = vrot.slane %v407_v25, %v2048_v23  ;;  %v412_v27 = vrot.slane %v407_v25, %v2050_v24  ;;  %2816 = vst [vmem:[#allocation14_spill] sm:$0xff] %v2058_v29  ;;  %v424_v30 = vrot.slane %v407_v25, %v2056_v28  ;;  %v1062_v47 = vld [vmem:[#allocation6 + $0x7] ss:$8 sm:$0xf]  ;;  %vm338_vm3 = vcmask 1047809  }
  0x62   : > { %299 = vrot.lane.b32.xlu1 %v284_v15, %s1849_s21  ;;  %297 = vrot.lane.b32.xlu0 %v282_v16, %s1849_s21  ;;  %v420_v31 = vrot.slane %v407_v25, %v2058_v29  ;;  %v516_v33 = vrot.slane %v507_v32, %v2048_v23  ;;  %v512_v34 = vrot.slane %v507_v32, %v2050_v24  ;;  %v1196_v52 = vld [vmem:[#allocation6 + $0x20] ss:$8 sm:$0xf]  ;;  %vm313_vm4 = vcmask 261120   ;;  %s1586_s9 = sshll.u32 %s1900_s19, 10  ;;  %s1467_s26 = sshll.u32 %s242_s7, 4  ;;  %s2740_s26 = int_to_ptr.vmem [resolvable:$true] %s1467_s26 }
  0x63   : > { %v524_v35 = vrot.slane %v507_v32, %v2056_v28  ;;  %v520_v36 = vrot.slane %v507_v32, %v2058_v29  ;;  %v709_v38 = vrot.slane %v700_v37, %v2048_v23  ;;  %v705_v39 = vrot.slane %v700_v37, %v2050_v24  ;;  %v614_v59 = vld [vmem:[#allocation6 + $0x3] ss:$8 sm:$0xf]  ;;  %v976_v62 = vld [vmem:[#allocation6 + $0x6] ss:$8 sm:$0xf]  ;;  %s2738_s28 = scalar_lea.hbm %s2788_s4, %s1586_s9 }
  0x64   : > { %v717_v40 = vrot.slane %v700_v37, %v2056_v28  ;;  %v713_v41 = vrot.slane %v700_v37, %v2058_v29  ;;  %v843_v43 = vrot.slane %v834_v42, %v2048_v23  ;;  %v839_v44 = vrot.slane %v834_v42, %v2050_v24  ;;  %s1454_s6 = scalar_lea.sflag [#allocation5], %s2012_s10  ;;  %s1773_s19 = scalar_lea.vmem %s2740_s26, 1024 }
  0x65   : > { %v851_v45 = vrot.slane %v834_v42, %v2056_v28  ;;  %v847_v46 = vrot.slane %v834_v42, %v2058_v29  ;;  %v1071_v48 = vrot.slane %v1062_v47, %v2048_v23  ;;  %v1067_v49 = vrot.slane %v1062_v47, %v2050_v24  ;;  %p1774_p5 = scmp.ne.s32.totalorder %s2740_s26, %s1773_s19  ;;  %p2861_p2 = scmp.ne.s32.totalorder %s2809_s14, 0 }
  0x66   : > { %303 = vrot.lane.b32.xlu1 %v288_v20, %s1849_s21  ;;  %301 = vrot.lane.b32.xlu0 %v286_v21, %s1849_s21  ;;  %v1079_v50 = vrot.slane %v1062_v47, %v2056_v28  ;;  %v1075_v51 = vrot.slane %v1062_v47, %v2058_v29  ;;  %v1205_v53 = vrot.slane %v1196_v52, %v2048_v23  ;;  %vm343_vm5 = vcmask 261121   ;;  %s1852_s12 = smov [#allocation9]  }
  0x67   : > { %v1201_v54 = vrot.slane %v1196_v52, %v2050_v24  ;;  %v1213_v55 = vrot.slane %v1196_v52, %v2056_v28  ;;  %v1209_v56 = vrot.slane %v1196_v52, %v2058_v29  ;;  %v2110_v2 = vrot.slane %v614_v59, %v2050_v24  ;;  %p1775_p7 = pnand %p1774_p5, %p2861_p2  ;;  %s1777_s13 = sshll.u32 %s1852_s12, 4  ;;  %s1778_s13 = int_to_ptr.vmem [resolvable:$false] %s1777_s13 }
  0x68   : > { %vm345_vm6 = vcmask 1047808   ;;  %v2113_v3 = vrot.slane %v976_v62, %v2050_v24  ;;  %v2120_v8 = vrot.slane %v614_v59, %v2048_v23  ;;  %v2136_v13 = vrot.slane %v614_v59, %v2056_v28  ;;  %s1779_s25 = scalar_lea.vmem %s1778_s13, 2048  ;;  %p1780_p13 = scmp.lt.s32.totalorder %s2740_s26, %s1778_s13 }
  0x69   : > { %v2143_v15 = vrot.slane %v976_v62, %v2058_v29  ;;  %vm351_vm7 = vcmask 1040640   ;;  %vm356_vm8 = vcmask 253952   ;;  %vm660_vm9 = vcmask 1046528   ;;  %p1776_p12 = pneg %p1775_p7  ;;  %p1781_p0 = scmp.lt.s32.totalorder %s1779_s25, %s1773_s19 }
  0x6a   : > { %307 = vrot.lane.b32.xlu1 %v283_v11, %s1849_s21  ;;  %305 = vrot.lane.b32.xlu0 %v281_v12, %s1849_s21  ;;  %v2130_v11 = vrot.slane %v976_v62, %v2048_v23  ;;  %v2133_v12 = vrot.slane %v614_v59, %v2058_v29  ;;  %vm1022_vm10 = vcmask 1045504   ;;  %vm481_vm11 = vcmask 785408  }
  0x6b   : > { %p1782_p10 = por %p1781_p0, %p1780_p13 }
  0x6d   : > { %p1783_p3 = pnand %p1782_p10, %p1776_p12 }
  0x6e   : > { %311 = vrot.lane.b32.xlu1 %v287_v17, %s1849_s21  ;;  %309 = vrot.lane.b32.xlu0 %v285_v18, %s1849_s21 }
  0x72   : > { %427 = vrot.lane.b32.xlu1 %v416_v26, %s1849_s21  ;;  %425 = vrot.lane.b32.xlu0 %v412_v27, %s1849_s21  ;;  %v2166_v27 = vrot.slane %v976_v62, %v2056_v28 }
  0x76   : > { %431 = vrot.lane.b32.xlu1 %v424_v30, %s1849_s21  ;;  %429 = vrot.lane.b32.xlu0 %v420_v31, %s1849_s21 }
  0x7a   : > { %527 = vrot.lane.b32.xlu1 %v516_v33, %s1850_s23  ;;  %525 = vrot.lane.b32.xlu0 %v512_v34, %s1850_s23 }
  0x7e   : > { %531 = vrot.lane.b32.xlu1 %v524_v35, %s1850_s23  ;;  %529 = vrot.lane.b32.xlu0 %v520_v36, %s1850_s23 }
  0x82   : > { %720 = vrot.lane.b32.xlu1 %v709_v38, %s1849_s21  ;;  %718 = vrot.lane.b32.xlu0 %v705_v39, %s1849_s21 }
  0x86   : > { %724 = vrot.lane.b32.xlu1 %v717_v40, %s1849_s21  ;;  %722 = vrot.lane.b32.xlu0 %v713_v41, %s1849_s21 }
  0x8a   : > { %854 = vrot.lane.b32.xlu1 %v843_v43, %s1850_s23  ;;  %852 = vrot.lane.b32.xlu0 %v839_v44, %s1850_s23 }
  0x8e   : > { %858 = vrot.lane.b32.xlu1 %v851_v45, %s1850_s23  ;;  %856 = vrot.lane.b32.xlu0 %v847_v46, %s1850_s23 }
  0x92   : > { %1082 = vrot.lane.b32.xlu1 %v1071_v48, %s1849_s21  ;;  %1080 = vrot.lane.b32.xlu0 %v1067_v49, %s1849_s21 }
  0x96   : > { %1086 = vrot.lane.b32.xlu1 %v1079_v50, %s1849_s21  ;;  %1084 = vrot.lane.b32.xlu0 %v1075_v51, %s1849_s21 }
  0x9a   : > { %1216 = vrot.lane.b32.xlu1 %v1205_v53, %s1850_s23  ;;  %1214 = vrot.lane.b32.xlu0 %v1201_v54, %s1850_s23 }
  0x9e   : > { %1220 = vrot.lane.b32.xlu1 %v1213_v55, %s1850_s23  ;;  %1218 = vrot.lane.b32.xlu0 %v1209_v56, %s1850_s23 }
  0xcc   : > { %v294_v57 = vpop.permute.xlu1 %293  ;;  %v290_v58 = vpop.permute.xlu0 %289 }
  0xcd   : > { %339 = vst.msk [vmem:[#allocation2] sm:$0xfe] %vm338_vm3, %v290_v58 }
  0xd0   : > { %v296_v60 = vpop.permute.xlu1 %295  ;;  %v292_v61 = vpop.permute.xlu0 %291 }
  0xd1   : > { %v316_v63 = vsel %vm313_vm4, %v294_v57, %v296_v60  ;;  %344 = vst.msk [vmem:[#allocation2 + $0x20] sm:$0xfe] %vm343_vm5, %v296_v60  ;;  %v314_v0 = vsel %vm313_vm4, %v290_v58, %v292_v61  ;;  %v315_v1 = vsel %vm313_vm4, %v292_v61, %v294_v57 }
  0xd2   : > { %342 = vst [vmem:[#allocation2 + $0x18] sm:$0xfe] %v316_v63  ;;  %340 = vst [vmem:[#allocation2 + $0x8] sm:$0xfe] %v314_v0 }
  0xd3   : > { %341 = vst [vmem:[#allocation2 + $0x10] sm:$0xfe] %v315_v1 }
  0xd4   : > { %v300_v4 = vpop.permute.xlu1 %299  ;;  %v298_v5 = vpop.permute.xlu0 %297  ;;  %v2115_v6 = vld [vmem:[#allocation2] sm:$0xfe] }
  0xd5   : > { %v2117_v7 = vld [vmem:[#allocation2] sm:$0xfc]  ;;  %v2123_v9 = vsel %vm313_vm4, %v298_v5, %v300_v4  ;;  %346 = vst.msk [vmem:[#allocation2 + $0x28] sm:$0xff] %vm345_vm6, %v298_v5  ;;  %v2127_v10 = vmul.f32 %v2110_v2, %v2115_v6 }
  0xd6   : > { %v2140_v14 = vmul.f32 %v2113_v3, %v2117_v7  ;;  %v2147_v18 = vmul.f32 %v2120_v8, %v2123_v9  ;;  %v2159_v22 = vmul.f32 %v2130_v11, %v2123_v9 }
  0xd7   : > { %v661_v21 = vrot.slane %v2127_v10, 1 }
  0xd8   : > { %v304_v16 = vpop.permute.xlu1 %303  ;;  %v302_v17 = vpop.permute.xlu0 %301  ;;  %v1023_v36 = vrot.slane %v2140_v14, 2  ;;  %v2798_v42 = vrot.slane %v2147_v18, 1  ;;  %v2795_v48 = vrot.slane %v2159_v22, 2 }
  0xd9   : > { %350 = vst.msk [vmem:[#allocation2 + $0x48] sm:$0xff] %vm313_vm4, %v304_v16  ;;  %v2151_v19 = vsel %vm313_vm4, %v300_v4, %v302_v17  ;;  %v2154_v20 = vsel %vm313_vm4, %v302_v17, %v304_v16  ;;  %v2163_v26 = vld [vmem:[#allocation2 + $0x18] sm:$0xfe]  ;;  %v2178_v35 = vld [vmem:[#allocation2 + $0x8] sm:$0xfe] }
  0xda   : > { %v2161_v25 = vld [vmem:[#allocation2 + $0x10] sm:$0xfe]  ;;  %v639_v32 = vmul.f32 %v2136_v13, %v2163_v26  ;;  %v2174_v33 = vld [vmem:[#allocation2 + $0x18] sm:$0xfc]  ;;  %v2183_v40 = vld [vmem:[#allocation2 + $0x8] sm:$0xfc]  ;;  %v637_v41 = vmul.f32 %v2120_v8, %v2178_v35  ;;  %v2190_v43 = vmul.f32 %v2133_v12, %v2151_v19  ;;  %v2194_v44 = vmul.f32 %v2136_v13, %v2154_v20 }
  0xdb   : > { %v2168_v30 = vld [vmem:[#allocation2 + $0x10] sm:$0xfc]  ;;  %v638_v31 = vmul.f32 %v2133_v12, %v2161_v25  ;;  %v1001_v49 = vmul.f32 %v2166_v27, %v2174_v33  ;;  %v999_v56 = vmul.f32 %v2130_v11, %v2183_v40  ;;  %v2221_v61 = vmul.f32 %v2143_v15, %v2151_v19 }
  0xdc   : > { %v1000_v34 = vmul.f32 %v2143_v15, %v2168_v30  ;;  %v308_v37 = vpop.permute.xlu1 %307  ;;  %v306_v38 = vpop.permute.xlu0 %305  ;;  %v2181_v39 = vld [vmem:[#allocation2 + $0x28] sm:$0xff]  ;;  %v670_v47 = vrot.slane %v639_v32, 1  ;;  %v664_v52 = vrot.slane %v637_v41, 1  ;;  %v2796_v53 = vrot.slane %v2190_v43, 1 }
  0xdd   : > { %v320_v45 = vsel %vm313_vm4, %v306_v38, %v308_v37  ;;  %352 = vst.msk [vmem:[#allocation2 + $0x50] sm:$0x1] %vm351_vm7, %v306_v38  ;;  %v667_v46 = vrot.slane %v638_v31, 1  ;;  %v2203_v51 = vmul.f32 %v2110_v2, %v2181_v39  ;;  %v2794_v54 = vrot.slane %v2194_v44, 1 }
  0xde   : > { %353 = vst [vmem:[#allocation2 + $0x58] sm:$0x1] %v320_v45  ;;  %v1029_v50 = vrot.slane %v1000_v34, 2  ;;  %v2209_v55 = vmul.f32 %v2113_v3, %v2181_v39  ;;  %v2217_v60 = vsel %vm660_vm9, %v664_v52, %v2798_v42  ;;  %v2225_v62 = vmul.f32 %v2166_v27, %v2154_v20 }
  0xdf   : > { %v662_v59 = vrot.slane %v2203_v51, 1  ;;  %2817 = vst [vmem:[#allocation15_spill] sm:$0xff] %v2217_v60  ;;  %v2233_v1 = vsel %vm660_vm9, %v667_v46, %v2796_v53  ;;  %v2238_v4 = vsel %vm660_vm9, %v670_v47, %v2794_v54  ;;  %v1026_v14 = vrot.slane %v999_v56, 2  ;;  %v2272_v51 = vld [vmem:[#allocation2 + $0x8] sm:$0xff] }
  0xe0   : > { %v312_v57 = vpop.permute.xlu1 %311  ;;  %v310_v58 = vpop.permute.xlu0 %309  ;;  %2818 = vst [vmem:[#allocation16_spill] sm:$0xff] %v2233_v1  ;;  %2819 = vst [vmem:[#allocation17_spill] sm:$0xff] %v2238_v4  ;;  %v1024_v10 = vrot.slane %v2209_v55, 2  ;;  %v2793_v16 = vrot.slane %v2221_v61, 2  ;;  %v1032_v17 = vrot.slane %v1001_v49, 2  ;;  %v2797_v31 = vrot.slane %v2225_v62, 2 }
  0xe1   : > { %357 = vst.msk [vmem:[#allocation2 + $0x70] sm:$0x1] %vm356_vm8, %v312_v57  ;;  %v321_v63 = vsel %vm313_vm4, %v308_v37, %v310_v58  ;;  %v322_v0 = vsel %vm313_vm4, %v310_v58, %v312_v57  ;;  %v2241_v5 = vsel %vm660_vm9, %v661_v21, %v662_v59  ;;  %v2248_v37 = vld [vmem:[#allocation2] sm:$0xff]  ;;  %v2260_v45 = vsel %vm1022_vm10, %v1026_v14, %v2795_v48  ;;  %v2292_v14 = vld [vmem:[#allocation2 + $0x18] sm:$0xff] }
  0xe2   : > { %354 = vst [vmem:[#allocation2 + $0x60] sm:$0x1] %v321_v63  ;;  %355 = vst [vmem:[#allocation2 + $0x68] sm:$0x1] %v322_v0  ;;  %v2255_v21 = vsel %vm1022_vm10, %v1023_v36, %v1024_v10  ;;  %v2265_v46 = vsel %vm1022_vm10, %v1029_v50, %v2793_v16  ;;  %v404_v63 = vld [vmem:[#allocation2 + $0x20] sm:$0xff] }
  0xe3   : > { %2820 = vst [vmem:[#allocation18_spill] sm:$0xff] %v2241_v5  ;;  %2821 = vst [vmem:[#allocation19_spill] sm:$0xff] %v2255_v21 }
  0xe4   : > { %v2246_v32 = vpop.permute.xlu1 %427  ;;  %v426_v34 = vpop.permute.xlu0 %425  ;;  %v2250_v38 = vld [vmem:[#allocation2 + $0x50] sm:$0x1]  ;;  %2822 = vst [vmem:[#allocation20_spill] sm:$0xff] %v2260_v45  ;;  %2823 = vst [vmem:[#allocation21_spill] sm:$0xff] %v2265_v46 }
  0xe5   : > { %v2252_v41 = vld [vmem:[#allocation2 + $0x50] sm:$0x3]  ;;  %v2269_v47 = vsel %vm313_vm4, %v426_v34, %v2246_v32  ;;  %v441_v49 = vmul.f32 %v426_v34, %v2248_v37  ;;  %2824 = vst [vmem:[#allocation22_spill] sm:$0xff] %v2272_v51  ;;  %v644_v36 = vmul.f32 %v2110_v2, %v2250_v38  ;;  %v2276_v52 = vld [vmem:[#allocation2 + $0x58] sm:$0x1]  ;;  %v2290_v2 = vsel %vm1022_vm10, %v1032_v17, %v2797_v31 }
  0xe6   : > { %v2278_v55 = vld [vmem:[#allocation2 + $0x58] sm:$0x3]  ;;  %v442_v56 = vmul.f32 %v2269_v47, %v2272_v51  ;;  %v1006_v50 = vmul.f32 %v2113_v3, %v2252_v41  ;;  %v645_v57 = vmul.f32 %v2120_v8, %v2276_v52  ;;  %2825 = vst [vmem:[#allocation23_spill] sm:$0xff] %v2290_v2 }
  0xe7   : > { %461 = vrot.lane.b32.xlu0 %v441_v49, %s1851_s30  ;;  %v673_v16 = vrot.slane %v644_v36, 1  ;;  %v1007_v8 = vmul.f32 %v2130_v11, %v2278_v55 }
  0xe8   : > { %v432_v58 = vpop.permute.xlu1 %431  ;;  %v430_v0 = vpop.permute.xlu0 %429  ;;  %463 = vrot.lane.b32.xlu1 %v442_v56, %s1851_s30  ;;  %v675_v3 = vrot.slane %v645_v57, 1  ;;  %v1035_v54 = vrot.slane %v1006_v50, 2 }
  0xe9   : > { %v445_v48 = vmul.f32 %v432_v58, %v404_v63  ;;  %v2298_v49 = vsel %vm313_vm4, %v430_v0, %v432_v58  ;;  %v2300_v53 = vld [vmem:[#allocation2 + $0x60] sm:$0x1]  ;;  %v2302_v17 = vld [vmem:[#allocation2 + $0x68] sm:$0x1]  ;;  %v2321_v45 = vsel %vm660_vm9, %v662_v59, %v673_v16  ;;  %v1037_v21 = vrot.slane %v1007_v8, 2 }
  0xea   : > { %v2304_v31 = vld [vmem:[#allocation2 + $0x60] sm:$0x3]  ;;  %v444_v42 = vmul.f32 %v2298_v49, %v2292_v14  ;;  %v2308_v56 = vld [vmem:[#allocation2 + $0x68] sm:$0x3]  ;;  %v646_v11 = vmul.f32 %v2133_v12, %v2300_v53  ;;  %v647_v36 = vmul.f32 %v2136_v13, %v2302_v17  ;;  %2826 = vst [vmem:[#allocation24_spill] sm:$0xff] %v2321_v45  ;;  %v2329_v13 = vsel %vm1022_vm10, %v1024_v10, %v1035_v54 }
  0xeb   : > { %469 = vrot.lane.b32.xlu0 %v445_v48, %s1851_s30  ;;  %v1008_v50 = vmul.f32 %v2143_v15, %v2304_v31  ;;  %v1009_v57 = vmul.f32 %v2166_v27, %v2308_v56  ;;  %v2827_v48 = vrot.slane %v2147_v18, 1  ;;  %2829 = vst [vmem:[#allocation26_spill] sm:$0xff] %v2329_v13  ;;  %v446_v27 = vmul.f32 %v426_v34, %v2181_v39 }
  0xec   : > { %v528_v2 = vpop.permute.xlu1 %527  ;;  %v526_v46 = vpop.permute.xlu0 %525  ;;  %467 = vrot.lane.b32.xlu1 %v444_v42, %s1851_s30  ;;  %v677_v4 = vrot.slane %v646_v11, 1  ;;  %v679_v1 = vrot.slane %v647_v36, 1  ;;  %v2830_v59 = vrot.slane %v2190_v43, 1  ;;  %v2832_v16 = vrot.slane %v2159_v22, 2 }
  0xed   : > { %v2326_v12 = vsel %vm660_vm9, %v2827_v48, %v675_v3  ;;  %v541_v15 = vmul.f32 %v526_v46, %v2248_v37  ;;  %v1039_v60 = vrot.slane %v1008_v50, 2  ;;  %v1041_v42 = vrot.slane %v1009_v57, 2 }
  0xee   : > { %2828 = vst [vmem:[#allocation25_spill] sm:$0xff] %v2326_v12  ;;  %v2337_v18 = vsel %vm660_vm9, %v2830_v59, %v677_v4  ;;  %v2342_v54 = vsel %vm1022_vm10, %v2832_v16, %v1037_v21  ;;  %v2834_v34 = vrot.slane %v2194_v44, 1  ;;  %v2836_v11 = vrot.slane %v2221_v61, 2  ;;  %v2355_v4 = vld [vmem:[#allocation2 + $0x48] sm:$0xff]  ;;  %v2367_v61 = vld [vmem:[#allocation2 + $0x10] sm:$0xff] }
  0xef   : > { %561 = vrot.lane.b32.xlu0 %v541_v15, %s1850_s23  ;;  %2831 = vst [vmem:[#allocation27_spill] sm:$0xff] %v2337_v18  ;;  %2833 = vst [vmem:[#allocation28_spill] sm:$0xff] %v2342_v54  ;;  %v450_v21 = vmul.f32 %v432_v58, %v2355_v4  ;;  %v434_v36 = vsel %vm313_vm4, %v2246_v32, %v430_v0  ;;  %v533_v50 = vsel %vm247_vm0, %v526_v46, %v528_v2 }
  0xf0   : > { %v532_v10 = vpop.permute.xlu1 %531  ;;  %v530_v3 = vpop.permute.xlu0 %529  ;;  %471 = vrot.lane.b32.xlu1 %v446_v27, %s1851_s30  ;;  %v2348_v8 = vsel %vm660_vm9, %v2834_v34, %v679_v1  ;;  %v2353_v43 = vsel %vm1022_vm10, %v2836_v11, %v1039_v60  ;;  %v2838_v44 = vrot.slane %v2225_v62, 2  ;;  %2840 = vst [vmem:[#allocation32_spill] sm:$0xff] %v2367_v61  ;;  %v443_v58 = vmul.f32 %v434_v36, %v2367_v61 }
  0xf1   : > { %2835 = vst [vmem:[#allocation29_spill] sm:$0xff] %v2348_v8  ;;  %2837 = vst [vmem:[#allocation30_spill] sm:$0xff] %v2353_v43  ;;  %v545_v22 = vmul.f32 %v532_v10, %v404_v63  ;;  %v534_v32 = vsel %vm247_vm0, %v528_v2, %v530_v3  ;;  %v542_v63 = vmul.f32 %v533_v50, %v2272_v51 }
  0xf2   : > { %v2365_v1 = vsel %vm1022_vm10, %v2838_v44, %v1041_v42  ;;  %v535_v0 = vsel %vm247_vm0, %v530_v3, %v532_v10  ;;  %v543_v15 = vmul.f32 %v534_v32, %v2367_v61 }
  0xf3   : > { %569 = vrot.lane.b32.xlu0 %v545_v22, %s1850_s23  ;;  %2839 = vst [vmem:[#allocation31_spill] sm:$0xff] %v2365_v1  ;;  %v544_v42 = vmul.f32 %v535_v0, %v2292_v14  ;;  %v546_v1 = vmul.f32 %v526_v46, %v2181_v39  ;;  %v449_v46 = vmul.f32 %v2298_v49, %v2154_v20 }
  0xf4   : > { %v2369_v60 = vpop.permute.xlu1 %720  ;;  %v2371_v57 = vpop.permute.xlu0 %718  ;;  %479 = vrot.lane.b32.xlu1 %v450_v21, %s1851_s30  ;;  %v547_v49 = vmul.f32 %v533_v50, %v2123_v9  ;;  %v697_v50 = vld [vmem:[#allocation2 + $0x20] sm:$0xfe] }
  0xf7   : > { %465 = vrot.lane.b32.xlu0 %v443_v58, %s1851_s30 }
  0xf8   : > { %v725_v62 = vpop.permute.xlu1 %724  ;;  %v723_v48 = vpop.permute.xlu0 %722  ;;  %563 = vrot.lane.b32.xlu1 %v542_v63, %s1850_s23 }
  0xf9   : > { %v727_v27 = vsel %vm313_vm4, %v2369_v60, %v723_v48  ;;  %v728_v59 = vsel %vm313_vm4, %v723_v48, %v725_v62  ;;  %v447_v48 = vmul.f32 %v2269_v47, %v2123_v9  ;;  %v550_v47 = vmul.f32 %v532_v10, %v2355_v4 }
  0xfa   : > { %v736_v2 = vmul.f32 %v727_v27, %v2161_v25  ;;  %v741_v16 = vmul.f32 %v727_v27, %v2151_v19  ;;  %v737_v3 = vmul.f32 %v728_v59, %v2163_v26  ;;  %v742_v34 = vmul.f32 %v728_v59, %v2154_v20 }
  0xfb   : > { %565 = vrot.lane.b32.xlu0 %v543_v15, %s1850_s23  ;;  %v746_v15 = vmul.f32 %v727_v27, %v2300_v53  ;;  %v448_v10 = vmul.f32 %v434_v36, %v2151_v19  ;;  %v549_v36 = vmul.f32 %v535_v0, %v2154_v20  ;;  %v738_v12 = vmul.f32 %v725_v62, %v697_v50 }
  0xfc   : > { %v770_v11 = vrot.slane %v736_v2, 1  ;;  %v771_v22 = vrot.slane %v741_v16, 1  ;;  %v2390_v21 = vpop.permute.xlu1 %854  ;;  %v2392_v44 = vpop.permute.xlu0 %852  ;;  %567 = vrot.lane.b32.xlu1 %v544_v42, %s1850_s23  ;;  %v773_v58 = vrot.slane %v737_v3, 1  ;;  %v774_v63 = vrot.slane %v742_v34, 1 }
  0xfd   : > { %v747_v2 = vmul.f32 %v728_v59, %v2302_v17  ;;  %v783_v3 = vrot.slane %v746_v15, 1  ;;  %v743_v8 = vmul.f32 %v725_v62, %v2355_v4  ;;  %v776_v45 = vrot.slane %v738_v12, 1 }
  0xfe   : > { %v2400_v43 = vsel %vm660_vm9, %v770_v11, %v771_v22  ;;  %v2410_v42 = vsel %vm660_vm9, %v773_v58, %v774_v63  ;;  %v739_v11 = vmul.f32 %v2371_v57, %v2181_v39  ;;  %v744_v58 = vmul.f32 %v2371_v57, %v2250_v38 }
  0xff   : > { %473 = vrot.lane.b32.xlu0 %v447_v48, %s1851_s30  ;;  %v785_v27 = vrot.slane %v747_v2, 1  ;;  %v548_v48 = vmul.f32 %v534_v32, %v2151_v19  ;;  %v2443_v32 = vld [vmem:[#allocation2 + $0x70] sm:$0x1]  ;;  %v777_v5 = vrot.slane %v743_v8, 1 }
 0x100   : > { %v2404_v16 = vpop.permute.xlu1 %858  ;;  %v2406_v54 = vpop.permute.xlu0 %856  ;;  %571 = vrot.lane.b32.xlu1 %v546_v1, %s1850_s23  ;;  %v734_v1 = vmul.f32 %v2371_v57, %v2115_v6  ;;  %v765_v18 = vrot.slane %v739_v11, 1  ;;  %v726_v11 = vsel %vm313_vm4, %v2371_v57, %v2369_v60 }
 0x101   : > { %v735_v57 = vmul.f32 %v726_v11, %v2178_v35  ;;  %v740_v61 = vmul.f32 %v726_v11, %v2123_v9  ;;  %v872_v12 = vmul.f32 %v2404_v16, %v697_v50 }
 0x103   : > { %477 = vrot.lane.b32.xlu0 %v449_v46, %s1851_s30  ;;  %v2435_v46 = vsel %vm660_vm9, %v771_v22, %v783_v3  ;;  %v910_v23 = vrot.slane %v872_v12, 1  ;;  %v861_v12 = vsel %vm247_vm0, %v2390_v21, %v2406_v54 }
 0x104   : > { %v2416_v34 = vpop.permute.xlu1 %1082  ;;  %v2418_v59 = vpop.permute.xlu0 %1080  ;;  %579 = vrot.lane.b32.xlu1 %v550_v47, %s1850_s23  ;;  %v2438_v47 = vsel %vm660_vm9, %v774_v63, %v785_v27  ;;  %v748_v63 = vmul.f32 %v725_v62, %v2443_v32  ;;  %v779_v27 = vrot.slane %v744_v58, 1  ;;  %v878_v58 = vmul.f32 %v2392_v44, %v2250_v38 }
 0x106   : > { %v913_v50 = vrot.slane %v878_v58, 1 }
 0x107   : > { %573 = vrot.lane.b32.xlu0 %v547_v49, %s1850_s23  ;;  %v764_v49 = vrot.slane %v734_v1, 1  ;;  %v868_v1 = vmul.f32 %v2392_v44, %v2115_v6 }
 0x108   : > { %v2431_v15 = vpop.permute.xlu1 %1086  ;;  %v1085_v2 = vpop.permute.xlu0 %1084  ;;  %475 = vrot.lane.b32.xlu1 %v448_v10, %s1851_s30  ;;  %v873_v10 = vmul.f32 %v2392_v44, %v2181_v39 }
 0x109   : > { %v1089_v13 = vsel %vm313_vm4, %v2416_v34, %v1085_v2  ;;  %v1090_v22 = vsel %vm313_vm4, %v1085_v2, %v2431_v15  ;;  %v766_v62 = vsel %vm660_vm9, %v764_v49, %v765_v18  ;;  %v898_v60 = vrot.slane %v868_v1, 1 }
 0x10a   : > { %v1103_v3 = vmul.f32 %v1089_v13, %v2151_v19  ;;  %v1104_v0 = vmul.f32 %v1090_v22, %v2154_v20  ;;  %v1098_v2 = vmul.f32 %v1089_v13, %v2168_v30  ;;  %v1099_v6 = vmul.f32 %v1090_v22, %v2174_v33 }
 0x10b   : > { %577 = vrot.lane.b32.xlu0 %v549_v36, %s1850_s23  ;;  %v787_v36 = vrot.slane %v748_v63, 1  ;;  %v1108_v8 = vmul.f32 %v1089_v13, %v2304_v31  ;;  %v1109_v38 = vmul.f32 %v1090_v22, %v2308_v56  ;;  %v899_v49 = vrot.slane %v873_v10, 1 }
 0x10c   : > { %575 = vrot.lane.b32.xlu1 %v548_v48, %s1850_s23  ;;  %v780_v48 = vsel %vm660_vm9, %v765_v18, %v779_v27  ;;  %v1132_v18 = vrot.slane %v1098_v2, 2  ;;  %v1133_v63 = vrot.slane %v1103_v3, 2  ;;  %v778_v27 = vsel %vm660_vm9, %v776_v45, %v777_v5 }
 0x10d   : > { %v1135_v1 = vrot.slane %v1099_v6, 2  ;;  %v788_v51 = vsel %vm660_vm9, %v777_v5, %v787_v36  ;;  %v1145_v13 = vrot.slane %v1108_v8, 2  ;;  %v1147_v22 = vrot.slane %v1109_v38, 2 }
 0x10e   : > { %v900_v10 = vsel %vm660_vm9, %v898_v60, %v899_v49  ;;  %v2484_v3 = vsel %vm1022_vm10, %v1132_v18, %v1133_v63  ;;  %v914_v45 = vsel %vm660_vm9, %v899_v49, %v913_v50  ;;  %v768_v2 = vrot.slane %v740_v61, 1 }
 0x10f   : > { %789 = vrot.lane.b32.xlu0 %v766_v62, %s1851_s30  ;;  %v2475_v62 = vmul.f32 %v2404_v16, %v2355_v4  ;;  %v745_v36 = vmul.f32 %v726_v11, %v2276_v52  ;;  %v860_v60 = vsel %vm247_vm0, %v2392_v44, %v2390_v21  ;;  %v862_v8 = vsel %vm247_vm0, %v2406_v54, %v2404_v16 }
 0x110   : > { %799 = vrot.lane.b32.xlu1 %v780_v48, %s1851_s30  ;;  %v1136_v48 = vrot.slane %v1104_v0, 2  ;;  %v767_v0 = vrot.slane %v735_v57, 1  ;;  %v874_v11 = vmul.f32 %v860_v60, %v2123_v9  ;;  %v870_v44 = vmul.f32 %v861_v12, %v2161_v25 }
 0x111   : > { %v911_v29 = vrot.slane %v2475_v62, 1  ;;  %v781_v57 = vrot.slane %v745_v36, 1  ;;  %v875_v38 = vmul.f32 %v861_v12, %v2151_v19  ;;  %v871_v49 = vmul.f32 %v862_v8, %v2163_v26 }
 0x112   : > { %v2489_v5 = vsel %vm1022_vm10, %v1135_v1, %v1136_v48  ;;  %v2496_v58 = vsel %vm1022_vm10, %v1136_v48, %v1147_v22  ;;  %v769_v61 = vsel %vm660_vm9, %v767_v0, %v768_v2  ;;  %v902_v18 = vrot.slane %v874_v11, 1 }
 0x113   : > { %797 = vrot.lane.b32.xlu0 %v778_v27, %s1851_s30  ;;  %v912_v6 = vsel %vm660_vm9, %v910_v23, %v911_v29  ;;  %v869_v23 = vmul.f32 %v860_v60, %v2178_v35  ;;  %v782_v21 = vsel %vm660_vm9, %v768_v2, %v781_v57  ;;  %v904_v54 = vrot.slane %v870_v44, 1 }
 0x114   : > { %807 = vrot.lane.b32.xlu1 %v788_v51, %s1851_s30  ;;  %v2493_v51 = vsel %vm1022_vm10, %v1133_v63, %v1145_v13  ;;  %v905_v63 = vrot.slane %v875_v38, 1  ;;  %v880_v25 = vmul.f32 %v861_v12, %v2300_v53  ;;  %v907_v27 = vrot.slane %v871_v49, 1  ;;  %v1059_v12 = vld [vmem:[#allocation2 + $0x20] sm:$0xfc]  ;;  %v1217_v38 = vpop.permute.xlu1 %1216 }
 0x115   : > { %v901_v35 = vrot.slane %v869_v23, 1  ;;  %v881_v48 = vmul.f32 %v862_v8, %v2302_v17  ;;  %v882_v13 = vmul.f32 %v2404_v16, %v2443_v32  ;;  %v1096_v17 = vmul.f32 %v2418_v59, %v2117_v7 }
 0x116   : > { %v906_v50 = vsel %vm660_vm9, %v904_v54, %v905_v63  ;;  %v1100_v23 = vmul.f32 %v2431_v15, %v1059_v12  ;;  %v1105_v11 = vmul.f32 %v2431_v15, %v2355_v4  ;;  %v1106_v44 = vmul.f32 %v2418_v59, %v2252_v41 }
 0x117   : > { %923 = vrot.lane.b32.xlu0 %v900_v10, %s1850_s23  ;;  %v903_v26 = vsel %vm660_vm9, %v901_v35, %v902_v18  ;;  %v919_v22 = vrot.slane %v881_v48, 1  ;;  %v1101_v10 = vmul.f32 %v2418_v59, %v2181_v39 }
 0x118   : > { %933 = vrot.lane.b32.xlu1 %v914_v45, %s1850_s23  ;;  %v921_v45 = vrot.slane %v882_v13, 1  ;;  %v1139_v49 = vrot.slane %v1105_v11, 2  ;;  %v1141_v35 = vrot.slane %v1106_v44, 2 }
 0x119   : > { %v1127_v36 = vrot.slane %v1101_v10, 2 }
 0x11b   : > { %931 = vrot.lane.b32.xlu0 %v912_v6, %s1850_s23  ;;  %v1126_v6 = vrot.slane %v1096_v17, 2 }
 0x11c   : > { %791 = vrot.lane.b32.xlu1 %v769_v61, %s1851_s30  ;;  %v922_v61 = vsel %vm660_vm9, %v911_v29, %v921_v45  ;;  %v1215_v29 = vpop.permute.xlu0 %1214 }
 0x11f   : > { %793 = vrot.lane.b32.xlu0 %v2400_v43, %s1851_s30  ;;  %v876_v43 = vmul.f32 %v862_v8, %v2154_v20  ;;  %v1128_v8 = vsel %vm1022_vm10, %v1126_v6, %v1127_v36 }
 0x120   : > { %795 = vrot.lane.b32.xlu1 %v2410_v42, %s1851_s30  ;;  %v879_v42 = vmul.f32 %v860_v60, %v2276_v52  ;;  %v917_v52 = vrot.slane %v880_v25, 1  ;;  %v1142_v25 = vsel %vm1022_vm10, %v1127_v36, %v1141_v35 }
 0x121   : > { %v908_v1 = vrot.slane %v876_v43, 1 }
 0x122   : > { %v918_v32 = vsel %vm660_vm9, %v905_v63, %v917_v52 }
 0x123   : > { %801 = vrot.lane.b32.xlu0 %v782_v21, %s1851_s30  ;;  %v909_v53 = vsel %vm660_vm9, %v907_v27, %v908_v1  ;;  %v920_v2 = vsel %vm660_vm9, %v908_v1, %v919_v22  ;;  %v1138_v21 = vrot.slane %v1100_v23, 2  ;;  %v1222_v27 = vsel %vm247_vm0, %v1215_v29, %v1217_v38  ;;  %v1221_v1 = vpop.permute.xlu1 %1220 }
 0x124   : > { %803 = vrot.lane.b32.xlu1 %v2435_v46, %s1851_s30  ;;  %v915_v46 = vrot.slane %v879_v42, 1  ;;  %v1219_v42 = vpop.permute.xlu0 %1218  ;;  %v1236_v13 = vmul.f32 %v1222_v27, %v2123_v9 }
 0x126   : > { %v916_v16 = vsel %vm660_vm9, %v902_v18, %v915_v46  ;;  %v1140_v18 = vsel %vm1022_vm10, %v1138_v21, %v1139_v49  ;;  %v1231_v46 = vmul.f32 %v1222_v27, %v2183_v40 }
 0x127   : > { %805 = vrot.lane.b32.xlu0 %v2438_v47, %s1851_s30  ;;  %v1088_v47 = vsel %vm313_vm4, %v2418_v59, %v2416_v34  ;;  %v1060_v59 = vld [vmem:[#allocation2 + $0x70] sm:$0x3] }
 0x128   : > { %925 = vrot.lane.b32.xlu1 %v903_v26, %s1850_s23  ;;  %v1097_v0 = vmul.f32 %v1088_v47, %v2183_v40  ;;  %v1102_v34 = vmul.f32 %v1088_v47, %v2123_v9  ;;  %v1107_v43 = vmul.f32 %v1088_v47, %v2278_v55  ;;  %v1110_v63 = vmul.f32 %v2431_v15, %v1060_v59 }
 0x129   : > { %v1223_v26 = vsel %vm247_vm0, %v1217_v38, %v1219_v42  ;;  %v1224_v15 = vsel %vm247_vm0, %v1219_v42, %v1221_v1  ;;  %v1263_v10 = vrot.slane %v1231_v46, 2 }
 0x12a   : > { %v1129_v60 = vrot.slane %v1097_v0, 2  ;;  %v1130_v57 = vrot.slane %v1102_v34, 2  ;;  %v1143_v54 = vrot.slane %v1107_v43, 2  ;;  %v1233_v52 = vmul.f32 %v1224_v15, %v2174_v33 }
 0x12b   : > { %927 = vrot.lane.b32.xlu0 %v906_v50, %s1850_s23  ;;  %v1149_v50 = vrot.slane %v1110_v63, 2  ;;  %v1238_v17 = vmul.f32 %v1224_v15, %v2154_v20  ;;  %v1240_v0 = vmul.f32 %v1215_v29, %v2252_v41 }
 0x12c   : > { %929 = vrot.lane.b32.xlu1 %v909_v53, %s1850_s23  ;;  %v1131_v62 = vsel %vm1022_vm10, %v1129_v60, %v1130_v57  ;;  %v1144_v48 = vsel %vm1022_vm10, %v1130_v57, %v1143_v54  ;;  %v1237_v53 = vmul.f32 %v1223_v26, %v2151_v19  ;;  %v1269_v34 = vrot.slane %v1233_v52, 2  ;;  %v2843_v52 = vld [vmem:[#allocation22_spill] sm:$0xff] }
 0x12d   : > { %v1150_v40 = vsel %vm1022_vm10, %v1139_v49, %v1149_v50  ;;  %v1242_v60 = vmul.f32 %v1223_v26, %v2304_v31  ;;  %v1275_v57 = vrot.slane %v1240_v0, 2 }
 0x12e   : > { %v1267_v33 = vrot.slane %v1237_v53, 2 }
 0x12f   : > { %935 = vrot.lane.b32.xlu0 %v916_v16, %s1850_s23  ;;  %v1264_v16 = vrot.slane %v1236_v13, 2  ;;  %v1279_v44 = vrot.slane %v1242_v60, 2  ;;  %v2842_v13 = vld [vmem:[#allocation13_spill] sm:$0xff] }
 0x130   : > { %937 = vrot.lane.b32.xlu1 %v918_v32, %s1850_s23 }
 0x133   : > { %939 = vrot.lane.b32.xlu0 %v920_v2, %s1850_s23  ;;  %v1270_v2 = vrot.slane %v1238_v17, 2 }
 0x134   : > { %941 = vrot.lane.b32.xlu1 %v922_v61, %s1850_s23 }
 0x135   : > { %v1271_v41 = vsel %vm1022_vm10, %v1269_v34, %v1270_v2  ;;  %v2845_v34 = vld [vmem:[#allocation18_spill] sm:$0xff] }
 0x137   : > { %1151 = vrot.lane.b32.xlu0 %v1128_v8, %s1851_s30  ;;  %v1244_v8 = vmul.f32 %v1221_v1, %v1060_v59 }
 0x138   : > { %1153 = vrot.lane.b32.xlu1 %v1131_v62, %s1851_s30  ;;  %v366_v62 = vld [vmem:[#allocation6] ss:$8 sm:$0xf] }
 0x139   : > { %v371_v38 = vrot.slane %v366_v62, %v2050_v24  ;;  %v1283_v21 = vrot.slane %v1244_v8, 2  ;;  %v2847_v8 = vld [vmem:[#allocation16_spill] sm:$0xff] }
 0x13b   : > { %1155 = vrot.lane.b32.xlu0 %v2484_v3, %s1851_s30  ;;  %v1230_v3 = vmul.f32 %v1215_v29, %v2117_v7  ;;  %v1232_v7 = vmul.f32 %v1223_v26, %v2168_v30  ;;  %v1239_v30 = vmul.f32 %v1221_v1, %v2355_v4  ;;  %v1241_v4 = vmul.f32 %v1222_v27, %v2278_v55 }
 0x13c   : > { %1157 = vrot.lane.b32.xlu1 %v2489_v5, %s1851_s30  ;;  %v1235_v5 = vmul.f32 %v1215_v29, %v2181_v39  ;;  %v388_v35 = vmul.f32 %v371_v38, %v2248_v37  ;;  %v392_v60 = vmul.f32 %v371_v38, %v2181_v39 }
 0x13d   : > { %v1260_v47 = vrot.slane %v1230_v3, 2  ;;  %v1266_v32 = vrot.slane %v1232_v7, 2  ;;  %v1273_v61 = vrot.slane %v1239_v30, 2  ;;  %v1277_v11 = vrot.slane %v1241_v4, 2 }
 0x13e   : > { %v1261_v22 = vrot.slane %v1235_v5, 2  ;;  %v375_v7 = vrot.slane %v366_v62, %v2842_v13 }
 0x13f   : > { %1159 = vrot.lane.b32.xlu0 %v1140_v18, %s1851_s30  ;;  %v1268_v6 = vsel %vm1022_vm10, %v1266_v32, %v1267_v33  ;;  %v1278_v29 = vsel %vm1022_vm10, %v1264_v16, %v1277_v11  ;;  %v383_v18 = vrot.slane %v366_v62, %v2056_v28  ;;  %v1284_v63 = vsel %vm1022_vm10, %v1273_v61, %v1283_v21 }
 0x140   : > { %1161 = vrot.lane.b32.xlu1 %v1142_v25, %s1851_s30  ;;  %v1262_v45 = vsel %vm1022_vm10, %v1260_v47, %v1261_v22  ;;  %v1276_v55 = vsel %vm1022_vm10, %v1261_v22, %v1275_v57  ;;  %v389_v53 = vmul.f32 %v375_v7, %v2843_v52  ;;  %v2844_v47 = vld [vmem:[#allocation32_spill] sm:$0xff]  ;;  %v2846_v57 = vld [vmem:[#allocation15_spill] sm:$0xff] }
 0x141   : > { %v391_v27 = vmul.f32 %v383_v18, %v2292_v14 }
 0x143   : > { %1163 = vrot.lane.b32.xlu0 %v1144_v48, %s1851_s30 }
 0x144   : > { %1165 = vrot.lane.b32.xlu1 %v2493_v51, %s1851_s30  ;;  %v1234_v51 = vmul.f32 %v1221_v1, %v1059_v12  ;;  %v1243_v12 = vmul.f32 %v1224_v15, %v2308_v56  ;;  %v1280_v56 = vsel %vm1022_vm10, %v1267_v33, %v1279_v44  ;;  %v2841_v15 = vld [vmem:[#allocation14_spill] sm:$0xff] }
 0x145   : > { %v379_v50 = vrot.slane %v366_v62, %v2841_v15 }
 0x146   : > { %v1272_v36 = vrot.slane %v1234_v51, 2  ;;  %v1281_v31 = vrot.slane %v1243_v12, 2 }
 0x147   : > { %1167 = vrot.lane.b32.xlu0 %v2496_v58, %s1851_s30  ;;  %v1265_v58 = vsel %vm1022_vm10, %v1263_v10, %v1264_v16  ;;  %v390_v22 = vmul.f32 %v379_v50, %v2844_v47  ;;  %v394_v38 = vmul.f32 %v379_v50, %v2151_v19 }
 0x148   : > { %1169 = vrot.lane.b32.xlu1 %v1150_v40, %s1851_s30  ;;  %v1274_v23 = vsel %vm1022_vm10, %v1272_v36, %v1273_v61  ;;  %v1282_v59 = vsel %vm1022_vm10, %v1270_v2, %v1281_v31 }
 0x14b   : > { %1285 = vrot.lane.b32.xlu0 %v1262_v45, %s1850_s23 }
 0x14c   : > { %1287 = vrot.lane.b32.xlu1 %v1265_v58, %s1850_s23 }
 0x14f   : > { %1289 = vrot.lane.b32.xlu0 %v1268_v6, %s1850_s23 }
 0x150   : > { %1291 = vrot.lane.b32.xlu1 %v1271_v41, %s1850_s23 }
 0x153   : > { %1293 = vrot.lane.b32.xlu0 %v1274_v23, %s1850_s23 }
 0x154   : > { %1295 = vrot.lane.b32.xlu1 %v1276_v55, %s1850_s23  ;;  %v2848_v55 = vld [vmem:[#allocation17_spill] sm:$0xff] }
 0x157   : > { %1297 = vrot.lane.b32.xlu0 %v1278_v29, %s1850_s23  ;;  %v395_v29 = vmul.f32 %v383_v18, %v2154_v20  ;;  %v2849_v18 = vld [vmem:[#allocation24_spill] sm:$0xff] }
 0x158   : > { %1299 = vrot.lane.b32.xlu1 %v1280_v56, %s1850_s23 }
 0x159   : > { %v462_v49 = vpop.permute.xlu0 %461 }
 0x15a   : > { %v464_v43 = vpop.permute.xlu1 %463 }
 0x15b   : > { %v482_v54 = vsel %vm481_vm11, %v462_v49, %v464_v43  ;;  %1301 = vrot.lane.b32.xlu0 %v1282_v59, %s1850_s23 }
 0x15c   : > { %v498_v42 = vadd.f32 %v482_v54, %v388_v35  ;;  %1303 = vrot.lane.b32.xlu1 %v1284_v63, %s1850_s23 }
 0x15d   : > { %v470_v25 = vpop.permute.xlu0 %469 }
 0x15e   : > { %v468_v1 = vpop.permute.xlu1 %467 }
 0x15f   : > { %v485_v3 = vsel %vm481_vm11, %v468_v1, %v470_v25  ;;  %v393_v25 = vmul.f32 %v375_v7, %v2123_v9  ;;  %v2851_v9 = vld [vmem:[#allocation25_spill] sm:$0xff] }
 0x160   : > { %v501_v37 = vadd.f32 %v485_v3, %v391_v27 }
 0x161   : > { %v562_v5 = vpop.permute.xlu0 %561 }
 0x162   : > { %v472_v26 = vpop.permute.xlu1 %471 }
 0x165   : > { %v570_v48 = vpop.permute.xlu0 %569 }
 0x166   : > { %v480_v46 = vpop.permute.xlu1 %479 }
 0x169   : > { %v466_v17 = vpop.permute.xlu0 %465 }
 0x16a   : > { %v483_v40 = vsel %vm481_vm11, %v464_v43, %v466_v17  ;;  %v484_v14 = vsel %vm481_vm11, %v466_v17, %v468_v1  ;;  %v564_v10 = vpop.permute.xlu1 %563  ;;  %v2852_v17 = vld [vmem:[#allocation27_spill] sm:$0xff] }
 0x16b   : > { %v499_v16 = vadd.f32 %v483_v40, %v389_v53  ;;  %v500_v51 = vadd.f32 %v484_v14, %v390_v22  ;;  %v581_v30 = vsel %vm247_vm0, %v562_v5, %v564_v10  ;;  %v2850_v53 = vld [vmem:[#allocation29_spill] sm:$0xff] }
 0x16c   : > { %v597_v32 = vadd.f32 %v581_v30, %v498_v42 }
 0x16d   : > { %v566_v33 = vpop.permute.xlu0 %565 }
 0x16e   : > { %v582_v45 = vsel %vm247_vm0, %v564_v10, %v566_v33  ;;  %v568_v0 = vpop.permute.xlu1 %567  ;;  %v689_v2 = vadd.f32 %v2845_v34, %v597_v32 }
 0x16f   : > { %v598_v58 = vadd.f32 %v582_v45, %v499_v16  ;;  %v583_v6 = vsel %vm247_vm0, %v566_v33, %v568_v0  ;;  %v584_v36 = vsel %vm247_vm0, %v568_v0, %v570_v48 }
 0x170   : > { %v599_v61 = vadd.f32 %v583_v6, %v500_v51  ;;  %v600_v4 = vadd.f32 %v584_v36, %v501_v37 }
 0x171   : > { %v474_v41 = vpop.permute.xlu0 %473  ;;  %v690_v12 = vadd.f32 %v2846_v57, %v598_v58 }
 0x172   : > { %v486_v23 = vsel %vm481_vm11, %v472_v26, %v474_v41  ;;  %v572_v11 = vpop.permute.xlu1 %571  ;;  %v691_v44 = vadd.f32 %v2847_v8, %v599_v61  ;;  %v692_v62 = vadd.f32 %v2848_v55, %v600_v4 }
 0x173   : > { %v502_v31 = vadd.f32 %v486_v23, %v392_v60 }
 0x175   : > { %v478_v56 = vpop.permute.xlu0 %477 }
 0x176   : > { %v489_v21 = vsel %vm481_vm11, %v478_v56, %v480_v46  ;;  %v580_v49 = vpop.permute.xlu1 %579 }
 0x177   : > { %v505_v43 = vadd.f32 %v489_v21, %v395_v29 }
 0x179   : > { %v574_v35 = vpop.permute.xlu0 %573 }
 0x17a   : > { %v585_v39 = vsel %vm247_vm0, %v572_v11, %v574_v35  ;;  %v476_v59 = vpop.permute.xlu1 %475 }
 0x17b   : > { %v601_v54 = vadd.f32 %v585_v39, %v502_v31  ;;  %v487_v63 = vsel %vm481_vm11, %v474_v41, %v476_v59  ;;  %v488_v42 = vsel %vm481_vm11, %v476_v59, %v478_v56 }
 0x17c   : > { %v504_v27 = vadd.f32 %v488_v42, %v394_v38  ;;  %v503_v3 = vadd.f32 %v487_v63, %v393_v25  ;;  %v2854_v25 = vld [vmem:[#allocation20_spill] sm:$0xff] }
 0x17d   : > { %v578_v20 = vpop.permute.xlu0 %577  ;;  %v693_v1 = vadd.f32 %v2849_v18, %v601_v54 }
 0x17e   : > { %v588_v37 = vsel %vm247_vm0, %v578_v20, %v580_v49  ;;  %v576_v5 = vpop.permute.xlu1 %575 }
 0x17f   : > { %v604_v26 = vadd.f32 %v588_v37, %v505_v43  ;;  %v586_v48 = vsel %vm247_vm0, %v574_v35, %v576_v5  ;;  %v587_v19 = vsel %vm247_vm0, %v576_v5, %v578_v20  ;;  %v2853_v35 = vld [vmem:[#allocation19_spill] sm:$0xff]  ;;  %v2855_v37 = vld [vmem:[#allocation21_spill] sm:$0xff] }
 0x180   : > { %v602_v50 = vadd.f32 %v586_v48, %v503_v3  ;;  %v603_v46 = vadd.f32 %v587_v19, %v504_v27 }
 0x181   : > { %v790_v52 = vpop.permute.xlu0 %789  ;;  %v696_v47 = vadd.f32 %v2850_v53, %v604_v26  ;;  %v2856_v26 = vld [vmem:[#allocation23_spill] sm:$0xff] }
 0x182   : > { %v800_v22 = vpop.permute.xlu1 %799  ;;  %v694_v7 = vadd.f32 %v2851_v9, %v602_v50  ;;  %v695_v40 = vadd.f32 %v2852_v17, %v603_v46 }
 0x185   : > { %v798_v14 = vpop.permute.xlu0 %797 }
 0x186   : > { %v808_v10 = vpop.permute.xlu1 %807 }
 0x189   : > { %v924_v16 = vpop.permute.xlu0 %923 }
 0x18a   : > { %v934_v51 = vpop.permute.xlu1 %933 }
 0x18d   : > { %v932_v30 = vpop.permute.xlu0 %931 }
 0x18e   : > { %v792_v32 = vpop.permute.xlu1 %791 }
 0x18f   : > { %v809_v34 = vsel %vm481_vm11, %v790_v52, %v792_v32 }
 0x190   : > { %v825_v6 = vadd.f32 %v809_v34, %v689_v2 }
 0x191   : > { %v794_v33 = vpop.permute.xlu0 %793 }
 0x192   : > { %v796_v45 = vpop.permute.xlu1 %795  ;;  %v810_v61 = vsel %vm481_vm11, %v792_v32, %v794_v33 }
 0x193   : > { %v811_v4 = vsel %vm481_vm11, %v794_v33, %v796_v45  ;;  %v812_v60 = vsel %vm481_vm11, %v796_v45, %v798_v14  ;;  %v826_v55 = vadd.f32 %v810_v61, %v690_v12  ;;  %v2860_v45 = vld [vmem:[#allocation31_spill] sm:$0xff] }
 0x194   : > { %v827_v31 = vadd.f32 %v811_v4, %v691_v44  ;;  %v828_v29 = vadd.f32 %v812_v60, %v692_v62 }
 0x195   : > { %v802_v0 = vpop.permute.xlu0 %801 }
 0x196   : > { %v804_v58 = vpop.permute.xlu1 %803  ;;  %v813_v2 = vsel %vm481_vm11, %v800_v22, %v802_v0 }
 0x197   : > { %v814_v21 = vsel %vm481_vm11, %v802_v0, %v804_v58  ;;  %v829_v12 = vadd.f32 %v813_v2, %v693_v1  ;;  %v2857_v1 = vld [vmem:[#allocation26_spill] sm:$0xff] }
 0x198   : > { %v830_v44 = vadd.f32 %v814_v21, %v694_v7  ;;  %v2858_v7 = vld [vmem:[#allocation28_spill] sm:$0xff] }
 0x199   : > { %v806_v36 = vpop.permute.xlu0 %805 }
 0x19a   : > { %v816_v41 = vsel %vm481_vm11, %v806_v36, %v808_v10  ;;  %v926_v57 = vpop.permute.xlu1 %925  ;;  %v815_v20 = vsel %vm481_vm11, %v804_v58, %v806_v36 }
 0x19b   : > { %v832_v23 = vadd.f32 %v816_v41, %v696_v47  ;;  %v943_v11 = vsel %vm247_vm0, %v924_v16, %v926_v57  ;;  %v831_v52 = vadd.f32 %v815_v20, %v695_v40 }
 0x19c   : > { %v959_v8 = vadd.f32 %v943_v11, %v825_v6  ;;  %v1359_v11 = vld [vmem:[%s2787_s3] sm:$0xf] }
 0x19d   : > { %v928_v56 = vpop.permute.xlu0 %927  ;;  %v1364_v21 = vrot.slane %v1359_v11, %v2050_v24 }
 0x19e   : > { %v944_v49 = vsel %vm247_vm0, %v926_v57, %v928_v56  ;;  %v930_v43 = vpop.permute.xlu1 %929  ;;  %v1051_v39 = vadd.f32 %v2853_v35, %v959_v8  ;;  %v1329_v57 = vld [vmem:[#allocation8] sm:$0xf] }
 0x19f   : > { %v960_v38 = vadd.f32 %v944_v49, %v826_v55  ;;  %v945_v59 = vsel %vm247_vm0, %v928_v56, %v930_v43  ;;  %v946_v54 = vsel %vm247_vm0, %v930_v43, %v932_v30  ;;  %v2859_v30 = vld [vmem:[#allocation30_spill] sm:$0xff]  ;;  %v1338_v35 = vrot.slane %v1329_v57, %v2842_v13 }
 0x1a0   : > { %v961_v63 = vadd.f32 %v945_v59, %v827_v31  ;;  %v962_v42 = vadd.f32 %v946_v54, %v828_v29  ;;  %v1334_v31 = vrot.slane %v1329_v57, %v2050_v24  ;;  %v1342_v59 = vrot.slane %v1329_v57, %v2841_v15 }
 0x1a1   : > { %v936_v62 = vpop.permute.xlu0 %935  ;;  %v1052_v27 = vadd.f32 %v2854_v25, %v960_v38 }
 0x1a2   : > { %v947_v18 = vsel %vm247_vm0, %v934_v51, %v936_v62  ;;  %v938_v3 = vpop.permute.xlu1 %937  ;;  %v1053_v5 = vadd.f32 %v2855_v37, %v961_v63  ;;  %v1054_v48 = vadd.f32 %v2856_v26, %v962_v42 }
 0x1a3   : > { %v963_v19 = vadd.f32 %v947_v18, %v829_v12  ;;  %v948_v50 = vsel %vm247_vm0, %v936_v62, %v938_v3 }
 0x1a4   : > { %v964_v46 = vadd.f32 %v948_v50, %v830_v44  ;;  %v1368_v44 = vrot.slane %v1359_v11, %v2842_v13 }
 0x1a5   : > { %v940_v53 = vpop.permute.xlu0 %939  ;;  %v1055_v47 = vadd.f32 %v2857_v1, %v963_v19 }
 0x1a6   : > { %v949_v22 = vsel %vm247_vm0, %v938_v3, %v940_v53  ;;  %v942_v9 = vpop.permute.xlu1 %941  ;;  %v1056_v17 = vadd.f32 %v2858_v7, %v964_v46 }
 0x1a7   : > { %v965_v14 = vadd.f32 %v949_v22, %v831_v52  ;;  %v950_v10 = vsel %vm247_vm0, %v940_v53, %v942_v9 }
 0x1a8   : > { %v966_v16 = vadd.f32 %v950_v10, %v832_v23 }
 0x1a9   : > { %v1152_v51 = vpop.permute.xlu0 %1151  ;;  %v2682_v32 = vadd.f32 %v2859_v30, %v965_v14 }
 0x1aa   : > { %v1154_v33 = vpop.permute.xlu1 %1153  ;;  %v2685_v0 = vadd.f32 %v2860_v45, %v966_v16 }
 0x1ab   : > { %v1171_v41 = vsel %vm481_vm11, %v1152_v51, %v1154_v33 }
 0x1ac   : > { %v1187_v8 = vadd.f32 %v1171_v41, %v1051_v39 }
 0x1ad   : > { %v1156_v40 = vpop.permute.xlu0 %1155 }
 0x1ae   : > { %v1158_v34 = vpop.permute.xlu1 %1157  ;;  %v1172_v55 = vsel %vm481_vm11, %v1154_v33, %v1156_v40 }
 0x1af   : > { %v1173_v56 = vsel %vm481_vm11, %v1156_v40, %v1158_v34  ;;  %v1188_v43 = vadd.f32 %v1172_v55, %v1052_v27  ;;  %v1372_v27 = vrot.slane %v1359_v11, %v2841_v15  ;;  %v1376_v15 = vrot.slane %v1359_v11, %v2056_v28 }
 0x1b0   : > { %v1189_v54 = vadd.f32 %v1173_v56, %v1053_v5  ;;  %v1346_v5 = vrot.slane %v1329_v57, %v2056_v28 }
 0x1b1   : > { %v1160_v58 = vpop.permute.xlu0 %1159 }
 0x1b2   : > { %v1162_v6 = vpop.permute.xlu1 %1161  ;;  %v1174_v39 = vsel %vm481_vm11, %v1158_v34, %v1160_v58 }
 0x1b3   : > { %v1190_v18 = vadd.f32 %v1174_v39, %v1054_v48 }
 0x1b5   : > { %v1164_v36 = vpop.permute.xlu0 %1163 }
 0x1b6   : > { %v1166_v61 = vpop.permute.xlu1 %1165  ;;  %v1175_v3 = vsel %vm481_vm11, %v1162_v6, %v1164_v36 }
 0x1b7   : > { %v1176_v19 = vsel %vm481_vm11, %v1164_v36, %v1166_v61  ;;  %v1191_v22 = vadd.f32 %v1175_v3, %v1055_v47 }
 0x1b8   : > { %v1192_v9 = vadd.f32 %v1176_v19, %v1056_v17 }
 0x1b9   : > { %v1168_v4 = vpop.permute.xlu0 %1167 }
 0x1ba   : > { %v1170_v60 = vpop.permute.xlu1 %1169  ;;  %v1177_v16 = vsel %vm481_vm11, %v1166_v61, %v1168_v4 }
 0x1bb   : > { %v1178_v51 = vsel %vm481_vm11, %v1168_v4, %v1170_v60  ;;  %v1193_v34 = vadd.f32 %v1177_v16, %v2682_v32 }
 0x1bc   : > { %v1194_v61 = vadd.f32 %v1178_v51, %v2685_v0 }
 0x1bd   : > { %v1286_v23 = vpop.permute.xlu0 %1285 }
 0x1be   : > { %v1288_v29 = vpop.permute.xlu1 %1287 }
 0x1bf   : > { %v1305_v2 = vsel %vm247_vm0, %v1286_v23, %v1288_v29 }
 0x1c0   : > { %v1321_v49 = vadd.f32 %v1305_v2, %v1187_v8 }
 0x1c1   : > { %v1290_v38 = vpop.permute.xlu0 %1289 }
 0x1c2   : > { %v1351_v63 = vmul.f32 %v1334_v31, %v1321_v49  ;;  %v1306_v42 = vsel %vm247_vm0, %v1288_v29, %v1290_v38  ;;  %v1292_v12 = vpop.permute.xlu1 %1291 }
 0x1c3   : > { %v1322_v62 = vadd.f32 %v1306_v42, %v1188_v43  ;;  %v1307_v25 = vsel %vm247_vm0, %v1290_v38, %v1292_v12 }
 0x1c4   : > { %v2702_v24 = vadd.f32 %v1364_v21, %v1351_v63  ;;  %v1323_v20 = vadd.f32 %v1307_v25, %v1189_v54 }
 0x1c5   : > { %v1352_v37 = vmul.f32 %v1338_v35, %v1322_v62  ;;  %v1294_v26 = vpop.permute.xlu0 %1293 }
 0x1c6   : > { %v1572_v50 = vmul.f32 -1.442695, %v2702_v24  ;;  %v1353_v13 = vmul.f32 %v1342_v59, %v1323_v20  ;;  %v1308_v46 = vsel %vm247_vm0, %v1292_v12, %v1294_v26  ;;  %v1296_v52 = vpop.permute.xlu1 %1295 }
 0x1c7   : > { %v2710_v53 = vadd.f32 %v1368_v44, %v1352_v37  ;;  %v1324_v1 = vadd.f32 %v1308_v46, %v1190_v18 }
 0x1c8   : > { %1661 = vpow2.f32 %v1572_v50  ;;  %v2713_v48 = vadd.f32 %v1372_v27, %v1353_v13 }
 0x1c9   : > { %v1573_v7 = vmul.f32 -1.442695, %v2710_v53  ;;  %v1354_v14 = vmul.f32 %v1346_v5, %v1324_v1  ;;  %v1298_v10 = vpop.permute.xlu0 %1297 }
 0x1ca   : > { %v1574_v30 = vmul.f32 -1.442695, %v2713_v48  ;;  %v1309_v33 = vsel %vm247_vm0, %v1296_v52, %v1298_v10  ;;  %v1300_v45 = vpop.permute.xlu1 %1299 }
 0x1cb   : > { %1663 = vpow2.f32 %v1573_v7  ;;  %v2720_v28 = vadd.f32 %v1376_v15, %v1354_v14  ;;  %v1325_v40 = vadd.f32 %v1309_v33, %v1191_v22  ;;  %v1310_v47 = vsel %vm247_vm0, %v1298_v10, %v1300_v45 }
 0x1cc   : > { %1665 = vpow2.f32 %v1574_v30  ;;  %v1326_v17 = vadd.f32 %v1310_v47, %v1192_v9 }
 0x1cd   : > { %v1575_v58 = vmul.f32 -1.442695, %v2720_v28  ;;  %v1355_v6 = vmul.f32 %v1334_v31, %v1325_v40  ;;  %v1302_v36 = vpop.permute.xlu0 %1301 }
 0x1ce   : > { %v1356_v4 = vmul.f32 %v1338_v35, %v1326_v17  ;;  %v1311_v60 = vsel %vm247_vm0, %v1300_v45, %v1302_v36  ;;  %v1304_v41 = vpop.permute.xlu1 %1303 }
 0x1cf   : > { %1667 = vpow2.f32 %v1575_v58  ;;  %v1385_v57 = vadd.f32 %v1364_v21, %v1355_v6  ;;  %v1327_v23 = vadd.f32 %v1311_v60, %v1193_v34  ;;  %v1312_v11 = vsel %vm247_vm0, %v1302_v36, %v1304_v41 }
 0x1d0   : > { %v1386_v8 = vadd.f32 %v1368_v44, %v1356_v4  ;;  %v1328_v55 = vadd.f32 %v1312_v11, %v1194_v61 }
 0x1d1   : > { %v1576_v29 = vmul.f32 -1.442695, %v1385_v57  ;;  %v1357_v56 = vmul.f32 %v1342_v59, %v1327_v23 }
 0x1d2   : > { %v1577_v32 = vmul.f32 -1.442695, %v1386_v8  ;;  %v1358_v2 = vmul.f32 %v1346_v5, %v1328_v55 }
 0x1d3   : > { %1669 = vpow2.f32 %v1576_v29  ;;  %v1387_v31 = vadd.f32 %v1372_v27, %v1357_v56 }
 0x1d4   : > { %1671 = vpow2.f32 %v1577_v32  ;;  %v1388_v49 = vadd.f32 %v1376_v15, %v1358_v2 }
 0x1d5   : > { %v1662_v0 = vpop.eup %1661  ;;  %v1578_v43 = vmul.f32 -1.442695, %v1387_v31 }
 0x1d6   : > { %v1413_v35 = vadd.f32 1.0, %v1662_v0  ;;  %v1579_v38 = vmul.f32 -1.442695, %v1388_v49 }
 0x1d7   : > { %1673 = vpow2.f32 %v1578_v43 }
 0x1d8   : > { %v1664_v54 = vpop.eup %1663  ;;  %1675 = vrcp.f32 %v1413_v35 }
 0x1d9   : > { %v1666_v21 = vpop.eup %1665  ;;  %v1414_v39 = vadd.f32 1.0, %v1664_v54  ;;  %1677 = vpow2.f32 %v1579_v38 }
 0x1da   : > { %v1415_v63 = vadd.f32 1.0, %v1666_v21 }
 0x1db   : > { %1679 = vrcp.f32 %v1414_v39 }
 0x1dc   : > { %v1668_v42 = vpop.eup %1667  ;;  %1681 = vrcp.f32 %v1415_v63 }
 0x1dd   : > { %v1416_v59 = vadd.f32 1.0, %v1668_v42 }
 0x1df   : > { %1683 = vrcp.f32 %v1416_v59 }
 0x1e0   : > { %v1670_v12 = vpop.eup %1669 }
 0x1e1   : > { %v1672_v44 = vpop.eup %1671  ;;  %v1417_v62 = vadd.f32 1.0, %v1670_v12 }
 0x1e2   : > { %v1418_v25 = vadd.f32 1.0, %v1672_v44 }
 0x1e3   : > { %1685 = vrcp.f32 %v1417_v62 }
 0x1e4   : > { %v1674_v27 = vpop.eup %1673  ;;  %1687 = vrcp.f32 %v1418_v25 }
 0x1e5   : > { %v1676_v20 = vpop.eup %1675  ;;  %v1419_v18 = vadd.f32 1.0, %v1674_v27 }
 0x1e6   : > { %v1678_v3 = vpop.eup %1677  ;;  %v1437_v37 = vmul.f32 %v1676_v20, %v2702_v24 }
 0x1e7   : > { %1689 = vrcp.f32 %v1419_v18  ;;  %v1420_v5 = vadd.f32 1.0, %v1678_v3 }
 0x1e8   : > { %v1680_v26 = vpop.eup %1679  ;;  %1445 = vst [vmem:[%s242_s7] sm:$0xff] %v1437_v37 }
 0x1e9   : > { %v1682_v19 = vpop.eup %1681  ;;  %v1438_v50 = vmul.f32 %v1680_v26, %v2710_v53  ;;  %1691 = vrcp.f32 %v1420_v5 }
 0x1ea   : > { %v1439_v13 = vmul.f32 %v1682_v19, %v2713_v48 }
 0x1eb   : > { %1446 = vst [vmem:[%s242_s7 + $0x8] sm:$0xff] %v1438_v50 }
 0x1ec   : > { %v1684_v46 = vpop.eup %1683  ;;  %1447 = vst [vmem:[%s242_s7 + $0x10] sm:$0xff] %v1439_v13 }
 0x1ed   : > { %v1440_v52 = vmul.f32 %v1684_v46, %v2720_v28 }
 0x1ef   : > { %1448 = vst [vmem:[%s242_s7 + $0x18] sm:$0xff] %v1440_v52 }
 0x1f0   : > { %v1686_v24 = vpop.eup %1685 }
 0x1f1   : > { %v1688_v15 = vpop.eup %1687  ;;  %v1441_v1 = vmul.f32 %v1686_v24, %v1385_v57 }
 0x1f2   : > { %v1442_v22 = vmul.f32 %v1688_v15, %v1386_v8 }
 0x1f3   : > { %1449 = vst [vmem:[%s242_s7 + $0x20] sm:$0xff] %v1441_v1 }
 0x1f4   : > { %v1690_v9 = vpop.eup %1689  ;;  %1450 = vst [vmem:[%s242_s7 + $0x28] sm:$0xff] %v1442_v22 }
 0x1f5   : > { %v1443_v53 = vmul.f32 %v1690_v9, %v1387_v31 }
 0x1f6   : > { %v1692_v7 = vpop.eup %1691 }
 0x1f7   : > { %1451 = vst [vmem:[%s242_s7 + $0x30] sm:$0xff] %v1443_v53  ;;  %v1444_v48 = vmul.f32 %v1692_v7, %v1388_v49 }
 0x1f9   : > { %1452 = vst [vmem:[%s242_s7 + $0x38] sm:$0xff] %v1444_v48 }
 0x1fa   : > { %1786 = shalt.err (!%p1783_p3)
}
 0x1fb   : > { %s1787_s8 = scalar_lea.hbm %s2738_s28, 1024  ;;  %s1791_s5 = scalar_lea.hbm %s2788_s4, 2048 }
 0x1fc   : > { %p1788_p11 = scmp.ne.s32.totalorder %s2738_s28, %s1787_s8  ;;  %p1792_p4 = scmp.lt.s32.totalorder %s2738_s28, %s2788_s4 }
 0x1fd   : > { %p1793_p6 = scmp.lt.s32.totalorder %s1791_s5, %s1787_s8 }
 0x1fe   : > { %p1789_p9 = pnand %p1788_p11, %p2861_p2 }
 0x1ff   : > { %p1794_p8 = por %p1793_p6, %p1792_p4 }
 0x200   : > { %p1790_p1 = pneg %p1789_p9 }
 0x202   : > { %p1795_p5 = pnand %p1794_p8, %p1790_p1 }
 0x204   : > { %1798 = shalt.err (!%p1795_p5)
}
 0x205   : > { %s1853_s9 = smov 512  }
 0x206   : > { %1597 = dma.vmem_to_hbm [thread:$0]  (%p2861_p2), %s2740_s26, 1024, %s2738_s28, %s1454_s6, %s1853_s9, %s1853_s9, %s1849_s21  }
 0x207 PF: > { %s1482_s27 = sand.u32 1, %s1829_s15   ;;  %p2862_p7 = scmp.ne.s32.totalorder %s2806_s22, 0 }
 0x208   : > { %p2863_p12 = scmp.ge.s32.totalorder %s1841_s18, 2  ;;  %s1483_s24 = scalar_lea.sflag [#allocation5], %s1482_s27 }
 0x20a   : > { %p1611_p13 = pnand %p2863_p12, %p2862_p7 }
 0x20c   : > { %p1612_p0 = pneg %p1611_p13 }
 0x20e   : > { %1824 = dma.done.wait (%p1612_p0), %s1483_s24, 1024  }
 0x20f   : > { %1826 = vsyncadd (%p1612_p0), %s1483_s24, 4294966272  ;;  %p18_p10 = scmp.ge.s32.totalorder %s1954_s11, 4   ;;  %s2864_s15 = smov %s1833_s16 }
 0x210   : > { %s2865_s16 = smov %s1837_s17  ;;  %s2866_s17 = smov %s1970_s20 }
 0x211   : > { %s2867_s18 = smov %s1954_s11  ;;  %20 = sbr.rel (!%p18_p10) target bundleno = 6 (0x6), region = 97 }
 0x216   :  { %1488 = vsyncpa [#allocation4], 1 }
 0x217   :  { %1490 = vsyncpa [#allocation4 + $0x1], 1 }
 0x218   :  { %1491 = vsyncpa [#allocation7], 1 }
 0x219   :  { %1492 = vsyncpa [#allocation5], 1 }
 0x21a   :  { %1494 = vsyncpa [#allocation5 + $0x1], 1 }

</bundles_post_ra>
